<compile_context>
chip_gen: v6e
topology: v6e:2x2x1
jax: 0.10.0
libtpu: 0.0.40
codegen_flags: <defaults>
</compile_context>

<pallas_src>
import jax
import jax.numpy as jnp
import numpy as np
from jax.experimental import pallas as pl
from jax.experimental.pallas import tpu as pltpu


# ------------------------------ fused kernel ---------------------------------
def _make_dgcnn_kernel(layer_dims, k_pool, kw, c1, c2, g_per_step):
    l1 = (k_pool - 2) // 2 + 1          # MaxPool1d(2, 2) output length
    l2 = l1 - kw + 1                    # Conv1d(c1, c2, kw, stride=1) output length
    num_layers = len(layer_dims)
    G = g_per_step

    def kernel(a_ref, x_ref, wg_ref, bg_ref,
               wc1_ref, bc1_ref, wc2_ref, bc2_ref,
               wm1_ref, bm1_ref, wm2_ref, bm2_ref,
               out_ref, hbuf_ref):
        n = a_ref.shape[1]
        f_in = x_ref.shape[2]
        a_g = [a_ref[g] for g in range(G)]          # per-graph [n, n] blocks
        cdt = a_g[0].dtype

        # ---- GCN stack: h_l = tanh(A_g @ (h_{l-1} @ W_l) + b_l).
        # The shared h @ W_l transform runs once over all G*n node rows (rows are
        # restacked in the hbuf VMEM scratch); only the per-graph A_g matmul is
        # Python-unrolled over the G graphs of this grid step.
        for g in range(G):
            hbuf_ref[g * n:(g + 1) * n, :f_in] = x_ref[g]
        h_stacked = hbuf_ref[:, :f_in]              # [G*n, f_in]  compute dtype
        parts = [[] for _ in range(G)]              # per-graph f32 layer outputs
        off = 0
        for l, (fi, fo) in enumerate(layer_dims):
            w = wg_ref[l, :fi, :fo]                 # [fi, fo] compute dtype
            b = bg_ref[:, off:off + fo]             # [1, fo]  f32
            off += fo
            hw = jnp.dot(h_stacked, w, preferred_element_type=jnp.float32)
            for g in range(G):
                z = jnp.dot(a_g[g], hw[g * n:(g + 1) * n, :].astype(cdt),
                            preferred_element_type=jnp.float32)
                h = jnp.tanh(z + b)                 # [n, fo] f32
                parts[g].append(h)
                if l + 1 < num_layers:
                    hbuf_ref[g * n:(g + 1) * n, :fo] = h.astype(cdt)
            if l + 1 < num_layers:
                h_stacked = hbuf_ref[:, :fo]

        # readout weights / iotas loaded & built once per grid step (hoisted)
        wc1 = wc1_ref[...]; bc1 = bc1_ref[...]
        wc2 = wc2_ref[...]; bc2 = bc2_ref[...]
        wm1 = wm1_ref[...]; bm1 = bm1_ref[...]
        wm2 = wm2_ref[...]; bm2 = bm2_ref[...]
        row_i = jax.lax.broadcasted_iota(jnp.int32, (n, n), 0)
        col_i = jax.lax.broadcasted_iota(jnp.int32, (n, n), 1)
        eye = jnp.where(row_i == col_i, 1.0, 0.0)
        j_lt_i = row_i < col_i
        r_idx = jax.lax.broadcasted_iota(jnp.int32, (k_pool, n), 0).astype(jnp.float32)

        for g in range(G):
            feats = (parts[g][0] if num_layers == 1
                     else jnp.concatenate(parts[g], axis=-1))     # [n, D] f32
            s_col = parts[g][-1]                                  # [n, 1] sort key

            # ---- global_sort_pool: one-shot rank under descending score with
            # smallest-index tie-break; sel is a 0/1 [k, n] matrix, gather is one
            # MXU matmul.  Ranks >= n leave all-zero rows (zero padding if n < k).
            s_row = jnp.sum(s_col * eye, axis=0, keepdims=True)   # [1, n]
            greater = (s_col > s_row) | ((s_col == s_row) & j_lt_i)
            rank = jnp.sum(greater.astype(jnp.float32), axis=0, keepdims=True)
            sel = jnp.where(rank == r_idx, 1.0, 0.0).astype(cdt)  # [k, n]
            pooled = jnp.dot(sel, feats.astype(cdt),
                             preferred_element_type=jnp.float32)  # [k, D]

            # ---- conv1: Conv1d(1, c1, D, stride=D) on [1, k*D] == [k, D] @ [D, c1]
            y1 = jnp.maximum(
                jnp.dot(pooled, wc1, preferred_element_type=jnp.float32) + bc1,
                0.0)                                              # [k, c1]

            # ---- MaxPool1d(2, 2): pairwise max of static row slices (no matmuls)
            rows = [jnp.maximum(y1[2 * r:2 * r + 1, :], y1[2 * r + 1:2 * r + 2, :])
                    for r in range(l1)]

            # ---- conv2: im2col built in registers (lane concat), ONE matmul
            win = []
            for t in range(l2):
                pieces = [rows[t + w] for w in range(kw)]
                win.append(pieces[0] if kw == 1
                           else jnp.concatenate(pieces, axis=-1)) # [1, kw*c1]
            cols = win[0] if l2 == 1 else jnp.concatenate(win, axis=0)
            y2 = jnp.maximum(
                jnp.dot(cols, wc2, preferred_element_type=jnp.float32) + bc2,
                0.0)                                              # [l2, c2]

            # ---- flatten + MLP([dense, 32, 1]); dropout(0.5) is inference identity.
            # wm1 rows were pre-permuted in the wrapper so this position-major sum
            # equals PyTorch's channel-major x.view(B, -1) flatten exactly.
            acc = bm1                                             # [1, 32]
            for t in range(l2):
                acc = acc + jnp.dot(y2[t:t + 1, :], wm1[t * c2:(t + 1) * c2, :],
                                    preferred_element_type=jnp.float32)
            hmid = jnp.maximum(acc, 0.0)
            out_ref[g] = (jnp.dot(hmid, wm2, preferred_element_type=jnp.float32)
                          + bm2)                                  # [1, 1]

    return kernel


# ------------------------------ fused forward --------------------------------
def _pick_graphs_per_step(batch, n, f_in, itemsize, cap=8):
    # Largest divisor of the batch (capped to bound unrolled code size) whose
    # double-buffered A/X blocks stay within a conservative VMEM budget.
    budget = 8 * 1024 * 1024
    per_graph = (n * n + n * f_in) * itemsize
    g = 1
    for cand in range(1, min(batch, cap) + 1):
        if batch % cand == 0 and 2 * cand * per_graph <= budget:
            g = cand
    return g


def dgcnn_forward(x, a_blocks, params, k_pool,
                  compute_dtype=jnp.float32, graphs_per_step=None):
    B, n, _ = a_blocks.shape
    f_in = x.shape[-1]
    x_b = x.reshape(B, n, f_in)

    convs = params["convs"]
    wc1, bc1, wc2, bc2, wm1, bm1, wm2, bm2 = params["readout"]
    kw, c1, c2 = wc2.shape
    l1 = (k_pool - 2) // 2 + 1
    l2 = l1 - kw + 1
    layer_dims = tuple((int(w.shape[0]), int(w.shape[1])) for w, _ in convs)
    d_total = sum(fo for _, fo in layer_dims)
    assert l2 >= 1 and wm1.shape[0] == l2 * c2

    cdt = jnp.dtype(compute_dtype)
    if graphs_per_step is None:
        graphs_per_step = _pick_graphs_per_step(B, n, f_in, cdt.itemsize)
    G = int(graphs_per_step)
    assert B % G == 0, "graphs_per_step must divide the batch size"

    # GCN weights packed into one zero-padded [L, fi_max, fo_max] operand and the
    # biases into one [1, d_total] row (two constant-index-map inputs instead of
    # 2*num_layers tiny ones).
    fi_max = max(fi for fi, _ in layer_dims)
    fo_max = max(fo for _, fo in layer_dims)
    wg = np.zeros((len(layer_dims), fi_max, fo_max), np.float32)
    bg = np.zeros((1, d_total), np.float32)
    off = 0
    for l, (w, b) in enumerate(convs):
        wg[l, :w.shape[0], :w.shape[1]] = np.asarray(w)
        bg[0, off:off + b.shape[0]] = np.asarray(b)
        off += b.shape[0]

    # Rows of the first MLP weight reordered from PyTorch's channel-major
    # x.view(B, -1) flatten to the kernel's position-major order (identity if l2==1).
    j = jnp.arange(l2 * c2)
    wm1_k = wm1[(j % c2) * l2 + (j // c2)]

    inputs = [a_blocks.astype(cdt), x_b.astype(cdt),
              jnp.asarray(wg, dtype=cdt), jnp.asarray(bg),
              wc1, bc1.reshape(1, -1), wc2.reshape(kw * c1, c2), bc2.reshape(1, -1),
              wm1_k, bm1.reshape(1, -1), wm2, bm2.reshape(1, -1)]
    in_specs = [pl.BlockSpec((G, n, n), lambda s: (s, 0, 0)),
                pl.BlockSpec((G, n, f_in), lambda s: (s, 0, 0))]
    for arr in inputs[2:]:          # weights: whole-array blocks, constant index map
        in_specs.append(pl.BlockSpec(arr.shape, lambda s, nd=arr.ndim: (0,) * nd))

    kernel = _make_dgcnn_kernel(layer_dims, int(k_pool), int(kw), int(c1), int(c2), G)
    w_buf = max(f_in, fo_max)       # node-row restack scratch width

    out = pl.pallas_call(
        kernel,
        out_shape=jax.ShapeDtypeStruct((B, 1, 1), jnp.float32),
        grid_spec=pltpu.PrefetchScalarGridSpec(
            num_scalar_prefetch=0,
            grid=(B // G,),                                  # G graphs per grid step
            in_specs=in_specs,
            out_specs=pl.BlockSpec((G, 1, 1), lambda s: (s, 0, 0)),
            scratch_shapes=[pltpu.VMEM((G * n, w_buf), cdt)],  # shared-matmul restack
        ),
        # Graphs are independent -> megacore-shardable.
        # TODO(synk): on v7x verify this axis actually splits across the 2 TCs
        # (else switch to pltpu.CORE_PARALLEL / a core_map leading axis).
        compiler_params=pltpu.CompilerParams(
            dimension_semantics=("parallel",),
            vmem_limit_bytes=64 * 1024 * 1024),
    )(*inputs)
    return out.reshape(B, 1)


# ---------------------------- pure-JAX reference ------------------------------
def dgcnn_reference(x, a_blocks, params, k_pool):
    hi = jax.lax.Precision.HIGHEST
    B, n, _ = a_blocks.shape
    h = x.reshape(B, n, -1)
    parts = []
    for (w, b) in params["convs"]:
        hw = jnp.einsum("bnf,fh->bnh", h, w, precision=hi)
        h = jnp.tanh(jnp.einsum("bij,bjh->bih", a_blocks, hw, precision=hi) + b)
        parts.append(h)
    feats = jnp.concatenate(parts, axis=-1)                 # [B, n, D]
    order = jnp.argsort(-feats[:, :, -1], axis=1)           # stable, descending
    pooled = jnp.take_along_axis(feats, order[:, :, None], axis=1)[:, :k_pool, :]

    wc1, bc1, wc2, bc2, wm1, bm1, wm2, bm2 = params["readout"]
    kw, c1, c2 = wc2.shape
    y1 = jax.nn.relu(jnp.einsum("bkd,dc->bkc", pooled, wc1, precision=hi) + bc1)
    l1 = (k_pool - 2) // 2 + 1
    y1p = jnp.max(y1[:, :2 * l1, :].reshape(B, l1, 2, c1), axis=2)
    l2 = l1 - kw + 1
    cols = jnp.concatenate([y1p[:, w:w + l2, :] for w in range(kw)], axis=-1)
    y2 = jax.nn.relu(jnp.einsum("blc,cd->bld", cols, wc2.reshape(kw * c1, c2),
                                precision=hi) + bc2)
    flat = jnp.swapaxes(y2, 1, 2).reshape(B, -1)            # PyTorch channel-major
    hmid = jax.nn.relu(jnp.einsum("bi,ij->bj", flat, wm1, precision=hi) + bm1)
    return jnp.einsum("bi,ij->bj", hmid, wm2, precision=hi) + bm2


# ------------------------------- param init ----------------------------------
def init_params(key, num_features, hidden, num_layers, k_pool):
    c1, c2, kw = 16, 32, 5
    l1 = (k_pool - 2) // 2 + 1
    l2 = l1 - kw + 1
    dense_dim = l2 * c2

    keys = iter(jax.random.split(key, 32))

    def linear(fan_in, fan_out):
        w = (jax.random.normal(next(keys), (fan_in, fan_out), jnp.float32)
             / jnp.sqrt(float(fan_in)))
        b = 0.1 * jax.random.normal(next(keys), (fan_out,), jnp.float32)
        return w, b

    dims = ([(num_features, hidden)]
            + [(hidden, hidden)] * (num_layers - 1)
            + [(hidden, 1)])
    convs = [linear(fi, fo) for fi, fo in dims]
    d_total = sum(fo for _, fo in dims)          # hidden * num_layers + 1

    wc1, bc1 = linear(d_total, c1)               # Conv1d(1, 16, D, stride=D) as [D, 16]
    wc2 = (jax.random.normal(next(keys), (kw, c1, c2), jnp.float32)
           / jnp.sqrt(float(kw * c1)))           # Conv1d(16, 32, 5) as [kw, C1, C2]
    bc2 = 0.1 * jax.random.normal(next(keys), (c2,), jnp.float32)
    wm1, bm1 = linear(dense_dim, 32)
    wm2, bm2 = linear(32, 1)
    return {"convs": convs,
            "readout": (wc1, bc1, wc2, bc2, wm1, bm1, wm2, bm2)}


if __name__ == "__main__":
    key = jax.random.PRNGKey(0)
    num_features = 20       # netlsd.heat with 20 timescales
    hidden = 32             # hidden_channels
    num_layers = 2
    k_pool = 10             # DGCNN sort-pool k (max(10, ...) in the reference)
    B = 4                   # graphs in the batch
    nodes_per_graph = 12
    N = B * nodes_per_graph

    k_x, k_adj, k_p = jax.random.split(key, 3)
    x = jax.random.normal(k_x, (N, num_features), jnp.float32)

    # deterministic random undirected graphs; GCNConv normalization
    # D^-1/2 (A + I) D^-1/2 kept as per-graph blocks [B, n, n] (the block-diagonal
    # structure is exactly what the kernel's per-graph A blocks exploit).
    adj_keys = jax.random.split(k_adj, B)
    blocks = []
    for b in range(B):
        a = jax.random.bernoulli(adj_keys[b], 0.3,
                                 (nodes_per_graph, nodes_per_graph))
        a = jnp.triu(a, 1)
        a = (a | a.T).astype(jnp.float32)
        a_hat = a + jnp.eye(nodes_per_graph, dtype=jnp.float32)
        d_inv_sqrt = 1.0 / jnp.sqrt(a_hat.sum(axis=1))
        blocks.append(a_hat * d_inv_sqrt[:, None] * d_inv_sqrt[None, :])
    a_blocks = jnp.stack(blocks, axis=0)

    params = init_params(k_p, num_features, hidden, num_layers, k_pool)

    # fused Pallas forward (f32) checked against the pure-JAX reference
    out = jax.block_until_ready(dgcnn_forward(x, a_blocks, params, k_pool))
    assert out.shape == (B, 1), out.shape
    ref = jax.block_until_ready(dgcnn_reference(x, a_blocks, params, k_pool))
    assert np.allclose(np.asarray(out), np.asarray(ref), rtol=2e-2, atol=2e-2), (
        np.asarray(out), np.asarray(ref))

    # bf16 compute-dtype path (halves A/X DMA bytes + VMEM, f32 MXU accumulation).
    # TODO(synk): bf16 scores can reorder near-tied nodes in the top-k vs the f32
    # reference, so only shape/finiteness is asserted for this path.
    out_bf16 = jax.block_until_ready(
        dgcnn_forward(x, a_blocks, params, k_pool, compute_dtype=jnp.bfloat16))
    assert out_bf16.shape == (B, 1)
    assert bool(jnp.all(jnp.isfinite(out_bf16)))

    print("KERNEL_OK")
</pallas_src>

<mosaic_0001>
module attributes {stable_mosaic.version = 11 : i64} {
  func.func @kernel(%arg0: i32, %arg1: memref<4x12x12xf32, #tpu.memory_space<vmem>>, %arg2: memref<4x12x20xf32, #tpu.memory_space<vmem>>, %arg3: memref<3x32x32xf32, #tpu.memory_space<vmem>>, %arg4: memref<1x65xf32, #tpu.memory_space<vmem>>, %arg5: memref<65x16xf32, #tpu.memory_space<vmem>>, %arg6: memref<1x16xf32, #tpu.memory_space<vmem>>, %arg7: memref<80x32xf32, #tpu.memory_space<vmem>>, %arg8: memref<1x32xf32, #tpu.memory_space<vmem>>, %arg9: memref<32x32xf32, #tpu.memory_space<vmem>>, %arg10: memref<1x32xf32, #tpu.memory_space<vmem>>, %arg11: memref<32x1xf32, #tpu.memory_space<vmem>>, %arg12: memref<1x1xf32, #tpu.memory_space<vmem>>, %arg13: memref<4x1x1xf32, #tpu.memory_space<vmem>>, %arg14: memref<48x32xf32, #tpu.memory_space<vmem>>) attributes {dimension_semantics = [#tpu.dimension_semantics<parallel>], iteration_bounds = array<i64: 1>, scalar_prefetch = 0 : i64, scratch_operands = 1 : i64, tpu.core_type = #tpu.core_type<tc>, window_params = [{transform_indices = @transform_0, window_bounds = array<i64: 4, 12, 12>}, {transform_indices = @transform_1, window_bounds = array<i64: 4, 12, 20>}, {pipeline_mode = #tpu.pipeline_mode<synchronous>, transform_indices = @transform_2, window_bounds = array<i64: 3, 32, 32>}, {pipeline_mode = #tpu.pipeline_mode<synchronous>, transform_indices = @transform_3, window_bounds = array<i64: 1, 65>}, {pipeline_mode = #tpu.pipeline_mode<synchronous>, transform_indices = @transform_4, window_bounds = array<i64: 65, 16>}, {pipeline_mode = #tpu.pipeline_mode<synchronous>, transform_indices = @transform_5, window_bounds = array<i64: 1, 16>}, {pipeline_mode = #tpu.pipeline_mode<synchronous>, transform_indices = @transform_6, window_bounds = array<i64: 80, 32>}, {pipeline_mode = #tpu.pipeline_mode<synchronous>, transform_indices = @transform_7, window_bounds = array<i64: 1, 32>}, {pipeline_mode = #tpu.pipeline_mode<synchronous>, transform_indices = @transform_8, window_bounds = array<i64: 32, 32>}, {pipeline_mode = #tpu.pipeline_mode<synchronous>, transform_indices = @transform_9, window_bounds = array<i64: 1, 32>}, {pipeline_mode = #tpu.pipeline_mode<synchronous>, transform_indices = @transform_10, window_bounds = array<i64: 32, 1>}, {pipeline_mode = #tpu.pipeline_mode<synchronous>, transform_indices = @transform_11, window_bounds = array<i64: 1, 1>}, {transform_indices = @transform_12, window_bounds = array<i64: 4, 1, 1>}]} {
    %c0 = arith.constant 0 : index
    %c0_0 = arith.constant 0 : index
    %c0_1 = arith.constant 0 : index
    %0 = vector.load %arg1[%c0, %c0_0, %c0_1] : memref<4x12x12xf32, #tpu.memory_space<vmem>>, vector<1x12x12xf32>
    %1 = vector.shape_cast %0 : vector<1x12x12xf32> to vector<12x12xf32>
    %c1 = arith.constant 1 : index
    %c0_2 = arith.constant 0 : index
    %c0_3 = arith.constant 0 : index
    %2 = vector.load %arg1[%c1, %c0_2, %c0_3] : memref<4x12x12xf32, #tpu.memory_space<vmem>>, vector<1x12x12xf32>
    %3 = vector.shape_cast %2 : vector<1x12x12xf32> to vector<12x12xf32>
    %c2 = arith.constant 2 : index
    %c0_4 = arith.constant 0 : index
    %c0_5 = arith.constant 0 : index
    %4 = vector.load %arg1[%c2, %c0_4, %c0_5] : memref<4x12x12xf32, #tpu.memory_space<vmem>>, vector<1x12x12xf32>
    %5 = vector.shape_cast %4 : vector<1x12x12xf32> to vector<12x12xf32>
    %c3 = arith.constant 3 : index
    %c0_6 = arith.constant 0 : index
    %c0_7 = arith.constant 0 : index
    %6 = vector.load %arg1[%c3, %c0_6, %c0_7] : memref<4x12x12xf32, #tpu.memory_space<vmem>>, vector<1x12x12xf32>
    %7 = vector.shape_cast %6 : vector<1x12x12xf32> to vector<12x12xf32>
    %c0_8 = arith.constant 0 : index
    %c0_9 = arith.constant 0 : index
    %c0_10 = arith.constant 0 : index
    %8 = vector.load %arg2[%c0_8, %c0_9, %c0_10] : memref<4x12x20xf32, #tpu.memory_space<vmem>>, vector<1x12x20xf32>
    %9 = vector.shape_cast %8 : vector<1x12x20xf32> to vector<12x20xf32>
    %c0_11 = arith.constant 0 : index
    %c0_12 = arith.constant 0 : index
    %10 = vector.load %arg14[%c0_11, %c0_12] : memref<48x32xf32, #tpu.memory_space<vmem>>, vector<12x20xf32>
    tpu.vector_store %arg14[%c0_11, %c0_12], %9 {strides = array<i32>} : memref<48x32xf32, #tpu.memory_space<vmem>>, vector<12x20xf32>,
    %c1_13 = arith.constant 1 : index
    %c0_14 = arith.constant 0 : index
    %c0_15 = arith.constant 0 : index
    %11 = vector.load %arg2[%c1_13, %c0_14, %c0_15] : memref<4x12x20xf32, #tpu.memory_space<vmem>>, vector<1x12x20xf32>
    %12 = vector.shape_cast %11 : vector<1x12x20xf32> to vector<12x20xf32>
    %c12 = arith.constant 12 : index
    %c0_16 = arith.constant 0 : index
    %13 = vector.load %arg14[%c12, %c0_16] : memref<48x32xf32, #tpu.memory_space<vmem>>, vector<12x20xf32>
    tpu.vector_store %arg14[%c12, %c0_16], %12 {strides = array<i32>} : memref<48x32xf32, #tpu.memory_space<vmem>>, vector<12x20xf32>,
    %c2_17 = arith.constant 2 : index
    %c0_18 = arith.constant 0 : index
    %c0_19 = arith.constant 0 : index
    %14 = vector.load %arg2[%c2_17, %c0_18, %c0_19] : memref<4x12x20xf32, #tpu.memory_space<vmem>>, vector<1x12x20xf32>
    %15 = vector.shape_cast %14 : vector<1x12x20xf32> to vector<12x20xf32>
    %c24 = arith.constant 24 : index
    %c0_20 = arith.constant 0 : index
    %16 = vector.load %arg14[%c24, %c0_20] : memref<48x32xf32, #tpu.memory_space<vmem>>, vector<12x20xf32>
    tpu.vector_store %arg14[%c24, %c0_20], %15 {strides = array<i32>} : memref<48x32xf32, #tpu.memory_space<vmem>>, vector<12x20xf32>,
    %c3_21 = arith.constant 3 : index
    %c0_22 = arith.constant 0 : index
    %c0_23 = arith.constant 0 : index
    %17 = vector.load %arg2[%c3_21, %c0_22, %c0_23] : memref<4x12x20xf32, #tpu.memory_space<vmem>>, vector<1x12x20xf32>
    %18 = vector.shape_cast %17 : vector<1x12x20xf32> to vector<12x20xf32>
    %c36 = arith.constant 36 : index
    %c0_24 = arith.constant 0 : index
    %19 = vector.load %arg14[%c36, %c0_24] : memref<48x32xf32, #tpu.memory_space<vmem>>, vector<12x20xf32>
    tpu.vector_store %arg14[%c36, %c0_24], %18 {strides = array<i32>} : memref<48x32xf32, #tpu.memory_space<vmem>>, vector<12x20xf32>,
    %c0_25 = arith.constant 0 : index
    %c0_26 = arith.constant 0 : index
    %20 = vector.load %arg14[%c0_25, %c0_26] : memref<48x32xf32, #tpu.memory_space<vmem>>, vector<48x20xf32>
    %c0_27 = arith.constant 0 : index
    %c0_28 = arith.constant 0 : index
    %c0_29 = arith.constant 0 : index
    %21 = vector.load %arg3[%c0_27, %c0_28, %c0_29] : memref<3x32x32xf32, #tpu.memory_space<vmem>>, vector<1x20x32xf32>
    %22 = vector.shape_cast %21 : vector<1x20x32xf32> to vector<20x32xf32>
    %c0_30 = arith.constant 0 : index
    %c0_31 = arith.constant 0 : index
    %23 = vector.load %arg4[%c0_30, %c0_31] : memref<1x65xf32, #tpu.memory_space<vmem>>, vector<1x32xf32>
    %cst = arith.constant dense<0.000000e+00> : vector<48x32xf32>
    %24 = tpu.matmul %20, %22, %cst {dimension_numbers = #tpu.dot_dimension_numbers<[1], [0], [0], [1], [0, 0, 1, 1], [], []>} : vector<48x20xf32>, vector<20x32xf32>, vector<48x32xf32> -> vector<48x32xf32>
    %25 = vector.extract_strided_slice %24 {offsets = [0, 0], sizes = [12, 32], strides = [1, 1]} : vector<48x32xf32> to vector<12x32xf32>
    %cst_32 = arith.constant dense<0.000000e+00> : vector<12x32xf32>
    %26 = tpu.matmul %1, %25, %cst_32 {dimension_numbers = #tpu.dot_dimension_numbers<[1], [0], [0], [1], [0, 0, 1, 1], [], []>} : vector<12x12xf32>, vector<12x32xf32>, vector<12x32xf32> -> vector<12x32xf32>
    %27 = vector.broadcast %23 : vector<1x32xf32> to vector<12x32xf32>
    %28 = arith.addf %26, %27 : vector<12x32xf32>
    %29 = math.tanh %28 : vector<12x32xf32>
    %c0_33 = arith.constant 0 : index
    %c0_34 = arith.constant 0 : index
    %30 = vector.load %arg14[%c0_33, %c0_34] : memref<48x32xf32, #tpu.memory_space<vmem>>, vector<12x32xf32>
    tpu.vector_store %arg14[%c0_33, %c0_34], %29 {strides = array<i32>} : memref<48x32xf32, #tpu.memory_space<vmem>>, vector<12x32xf32>,
    %31 = vector.extract_strided_slice %24 {offsets = [12, 0], sizes = [12, 32], strides = [1, 1]} : vector<48x32xf32> to vector<12x32xf32>
    %cst_35 = arith.constant dense<0.000000e+00> : vector<12x32xf32>
    %32 = tpu.matmul %3, %31, %cst_35 {dimension_numbers = #tpu.dot_dimension_numbers<[1], [0], [0], [1], [0, 0, 1, 1], [], []>} : vector<12x12xf32>, vector<12x32xf32>, vector<12x32xf32> -> vector<12x32xf32>
    %33 = vector.broadcast %23 : vector<1x32xf32> to vector<12x32xf32>
    %34 = arith.addf %32, %33 : vector<12x32xf32>
    %35 = math.tanh %34 : vector<12x32xf32>
    %c12_36 = arith.constant 12 : index
    %c0_37 = arith.constant 0 : index
    %36 = vector.load %arg14[%c12_36, %c0_37] : memref<48x32xf32, #tpu.memory_space<vmem>>, vector<12x32xf32>
    tpu.vector_store %arg14[%c12_36, %c0_37], %35 {strides = array<i32>} : memref<48x32xf32, #tpu.memory_space<vmem>>, vector<12x32xf32>,
    %37 = vector.extract_strided_slice %24 {offsets = [24, 0], sizes = [12, 32], strides = [1, 1]} : vector<48x32xf32> to vector<12x32xf32>
    %cst_38 = arith.constant dense<0.000000e+00> : vector<12x32xf32>
    %38 = tpu.matmul %5, %37, %cst_38 {dimension_numbers = #tpu.dot_dimension_numbers<[1], [0], [0], [1], [0, 0, 1, 1], [], []>} : vector<12x12xf32>, vector<12x32xf32>, vector<12x32xf32> -> vector<12x32xf32>
    %39 = vector.broadcast %23 : vector<1x32xf32> to vector<12x32xf32>
    %40 = arith.addf %38, %39 : vector<12x32xf32>
    %41 = math.tanh %40 : vector<12x32xf32>
    %c24_39 = arith.constant 24 : index
    %c0_40 = arith.constant 0 : index
    %42 = vector.load %arg14[%c24_39, %c0_40] : memref<48x32xf32, #tpu.memory_space<vmem>>, vector<12x32xf32>
    tpu.vector_store %arg14[%c24_39, %c0_40], %41 {strides = array<i32>} : memref<48x32xf32, #tpu.memory_space<vmem>>, vector<12x32xf32>,
    %43 = vector.extract_strided_slice %24 {offsets = [36, 0], sizes = [12, 32], strides = [1, 1]} : vector<48x32xf32> to vector<12x32xf32>
    %cst_41 = arith.constant dense<0.000000e+00> : vector<12x32xf32>
    %44 = tpu.matmul %7, %43, %cst_41 {dimension_numbers = #tpu.dot_dimension_numbers<[1], [0], [0], [1], [0, 0, 1, 1], [], []>} : vector<12x12xf32>, vector<12x32xf32>, vector<12x32xf32> -> vector<12x32xf32>
    %45 = vector.broadcast %23 : vector<1x32xf32> to vector<12x32xf32>
    %46 = arith.addf %44, %45 : vector<12x32xf32>
    %47 = math.tanh %46 : vector<12x32xf32>
    %c36_42 = arith.constant 36 : index
    %c0_43 = arith.constant 0 : index
    %48 = vector.load %arg14[%c36_42, %c0_43] : memref<48x32xf32, #tpu.memory_space<vmem>>, vector<12x32xf32>
    tpu.vector_store %arg14[%c36_42, %c0_43], %47 {strides = array<i32>} : memref<48x32xf32, #tpu.memory_space<vmem>>, vector<12x32xf32>,
    %c0_44 = arith.constant 0 : index
    %c0_45 = arith.constant 0 : index
    %49 = vector.load %arg14[%c0_44, %c0_45] : memref<48x32xf32, #tpu.memory_space<vmem>>, vector<48x32xf32>
    %c1_46 = arith.constant 1 : index
    %c0_47 = arith.constant 0 : index
    %c0_48 = arith.constant 0 : index
    %50 = vector.load %arg3[%c1_46, %c0_47, %c0_48] : memref<3x32x32xf32, #tpu.memory_space<vmem>>, vector<1x32x32xf32>
    %51 = vector.shape_cast %50 : vector<1x32x32xf32> to vector<32x32xf32>
    %c0_49 = arith.constant 0 : index
    %c32 = arith.constant 32 : index
    %52 = vector.load %arg4[%c0_49, %c32] : memref<1x65xf32, #tpu.memory_space<vmem>>, vector<1x32xf32>
    %cst_50 = arith.constant dense<0.000000e+00> : vector<48x32xf32>
    %53 = tpu.matmul %49, %51, %cst_50 {dimension_numbers = #tpu.dot_dimension_numbers<[1], [0], [0], [1], [0, 0, 1, 1], [], []>} : vector<48x32xf32>, vector<32x32xf32>, vector<48x32xf32> -> vector<48x32xf32>
    %54 = vector.extract_strided_slice %53 {offsets = [0, 0], sizes = [12, 32], strides = [1, 1]} : vector<48x32xf32> to vector<12x32xf32>
    %cst_51 = arith.constant dense<0.000000e+00> : vector<12x32xf32>
    %55 = tpu.matmul %1, %54, %cst_51 {dimension_numbers = #tpu.dot_dimension_numbers<[1], [0], [0], [1], [0, 0, 1, 1], [], []>} : vector<12x12xf32>, vector<12x32xf32>, vector<12x32xf32> -> vector<12x32xf32>
    %56 = vector.broadcast %52 : vector<1x32xf32> to vector<12x32xf32>
    %57 = arith.addf %55, %56 : vector<12x32xf32>
    %58 = math.tanh %57 : vector<12x32xf32>
    %c0_52 = arith.constant 0 : index
    %c0_53 = arith.constant 0 : index
    %59 = vector.load %arg14[%c0_52, %c0_53] : memref<48x32xf32, #tpu.memory_space<vmem>>, vector<12x32xf32>
    tpu.vector_store %arg14[%c0_52, %c0_53], %58 {strides = array<i32>} : memref<48x32xf32, #tpu.memory_space<vmem>>, vector<12x32xf32>,
    %60 = vector.extract_strided_slice %53 {offsets = [12, 0], sizes = [12, 32], strides = [1, 1]} : vector<48x32xf32> to vector<12x32xf32>
    %cst_54 = arith.constant dense<0.000000e+00> : vector<12x32xf32>
    %61 = tpu.matmul %3, %60, %cst_54 {dimension_numbers = #tpu.dot_dimension_numbers<[1], [0], [0], [1], [0, 0, 1, 1], [], []>} : vector<12x12xf32>, vector<12x32xf32>, vector<12x32xf32> -> vector<12x32xf32>
    %62 = vector.broadcast %52 : vector<1x32xf32> to vector<12x32xf32>
    %63 = arith.addf %61, %62 : vector<12x32xf32>
    %64 = math.tanh %63 : vector<12x32xf32>
    %c12_55 = arith.constant 12 : index
    %c0_56 = arith.constant 0 : index
    %65 = vector.load %arg14[%c12_55, %c0_56] : memref<48x32xf32, #tpu.memory_space<vmem>>, vector<12x32xf32>
    tpu.vector_store %arg14[%c12_55, %c0_56], %64 {strides = array<i32>} : memref<48x32xf32, #tpu.memory_space<vmem>>, vector<12x32xf32>,
    %66 = vector.extract_strided_slice %53 {offsets = [24, 0], sizes = [12, 32], strides = [1, 1]} : vector<48x32xf32> to vector<12x32xf32>
    %cst_57 = arith.constant dense<0.000000e+00> : vector<12x32xf32>
    %67 = tpu.matmul %5, %66, %cst_57 {dimension_numbers = #tpu.dot_dimension_numbers<[1], [0], [0], [1], [0, 0, 1, 1], [], []>} : vector<12x12xf32>, vector<12x32xf32>, vector<12x32xf32> -> vector<12x32xf32>
    %68 = vector.broadcast %52 : vector<1x32xf32> to vector<12x32xf32>
    %69 = arith.addf %67, %68 : vector<12x32xf32>
    %70 = math.tanh %69 : vector<12x32xf32>
    %c24_58 = arith.constant 24 : index
    %c0_59 = arith.constant 0 : index
    %71 = vector.load %arg14[%c24_58, %c0_59] : memref<48x32xf32, #tpu.memory_space<vmem>>, vector<12x32xf32>
    tpu.vector_store %arg14[%c24_58, %c0_59], %70 {strides = array<i32>} : memref<48x32xf32, #tpu.memory_space<vmem>>, vector<12x32xf32>,
    %72 = vector.extract_strided_slice %53 {offsets = [36, 0], sizes = [12, 32], strides = [1, 1]} : vector<48x32xf32> to vector<12x32xf32>
    %cst_60 = arith.constant dense<0.000000e+00> : vector<12x32xf32>
    %73 = tpu.matmul %7, %72, %cst_60 {dimension_numbers = #tpu.dot_dimension_numbers<[1], [0], [0], [1], [0, 0, 1, 1], [], []>} : vector<12x12xf32>, vector<12x32xf32>, vector<12x32xf32> -> vector<12x32xf32>
    %74 = vector.broadcast %52 : vector<1x32xf32> to vector<12x32xf32>
    %75 = arith.addf %73, %74 : vector<12x32xf32>
    %76 = math.tanh %75 : vector<12x32xf32>
    %c36_61 = arith.constant 36 : index
    %c0_62 = arith.constant 0 : index
    %77 = vector.load %arg14[%c36_61, %c0_62] : memref<48x32xf32, #tpu.memory_space<vmem>>, vector<12x32xf32>
    tpu.vector_store %arg14[%c36_61, %c0_62], %76 {strides = array<i32>} : memref<48x32xf32, #tpu.memory_space<vmem>>, vector<12x32xf32>,
    %c0_63 = arith.constant 0 : index
    %c0_64 = arith.constant 0 : index
    %78 = vector.load %arg14[%c0_63, %c0_64] : memref<48x32xf32, #tpu.memory_space<vmem>>, vector<48x32xf32>
    %c2_65 = arith.constant 2 : index
    %c0_66 = arith.constant 0 : index
    %c0_67 = arith.constant 0 : index
    %79 = vector.load %arg3[%c2_65, %c0_66, %c0_67] : memref<3x32x32xf32, #tpu.memory_space<vmem>>, vector<1x32x1xf32>
    %80 = vector.shape_cast %79 : vector<1x32x1xf32> to vector<32x1xf32>
    %c0_68 = arith.constant 0 : index
    %c64 = arith.constant 64 : index
    %81 = vector.load %arg4[%c0_68, %c64] : memref<1x65xf32, #tpu.memory_space<vmem>>, vector<1x1xf32>
    %cst_69 = arith.constant dense<0.000000e+00> : vector<48x1xf32>
    %82 = tpu.matmul %78, %80, %cst_69 {dimension_numbers = #tpu.dot_dimension_numbers<[1], [0], [0], [1], [0, 0, 1, 1], [], []>} : vector<48x32xf32>, vector<32x1xf32>, vector<48x1xf32> -> vector<48x1xf32>
    %83 = vector.extract_strided_slice %82 {offsets = [0, 0], sizes = [12, 1], strides = [1, 1]} : vector<48x1xf32> to vector<12x1xf32>
    %cst_70 = arith.constant dense<0.000000e+00> : vector<12x1xf32>
    %84 = tpu.matmul %1, %83, %cst_70 {dimension_numbers = #tpu.dot_dimension_numbers<[1], [0], [0], [1], [0, 0, 1, 1], [], []>} : vector<12x12xf32>, vector<12x1xf32>, vector<12x1xf32> -> vector<12x1xf32>
    %85 = vector.broadcast %81 : vector<1x1xf32> to vector<12x1xf32>
    %86 = arith.addf %84, %85 : vector<12x1xf32>
    %87 = math.tanh %86 : vector<12x1xf32>
    %88 = vector.extract_strided_slice %82 {offsets = [12, 0], sizes = [12, 1], strides = [1, 1]} : vector<48x1xf32> to vector<12x1xf32>
    %cst_71 = arith.constant dense<0.000000e+00> : vector<12x1xf32>
    %89 = tpu.matmul %3, %88, %cst_71 {dimension_numbers = #tpu.dot_dimension_numbers<[1], [0], [0], [1], [0, 0, 1, 1], [], []>} : vector<12x12xf32>, vector<12x1xf32>, vector<12x1xf32> -> vector<12x1xf32>
    %90 = vector.broadcast %81 : vector<1x1xf32> to vector<12x1xf32>
    %91 = arith.addf %89, %90 : vector<12x1xf32>
    %92 = math.tanh %91 : vector<12x1xf32>
    %93 = vector.extract_strided_slice %82 {offsets = [24, 0], sizes = [12, 1], strides = [1, 1]} : vector<48x1xf32> to vector<12x1xf32>
    %cst_72 = arith.constant dense<0.000000e+00> : vector<12x1xf32>
    %94 = tpu.matmul %5, %93, %cst_72 {dimension_numbers = #tpu.dot_dimension_numbers<[1], [0], [0], [1], [0, 0, 1, 1], [], []>} : vector<12x12xf32>, vector<12x1xf32>, vector<12x1xf32> -> vector<12x1xf32>
    %95 = vector.broadcast %81 : vector<1x1xf32> to vector<12x1xf32>
    %96 = arith.addf %94, %95 : vector<12x1xf32>
    %97 = math.tanh %96 : vector<12x1xf32>
    %98 = vector.extract_strided_slice %82 {offsets = [36, 0], sizes = [12, 1], strides = [1, 1]} : vector<48x1xf32> to vector<12x1xf32>
    %cst_73 = arith.constant dense<0.000000e+00> : vector<12x1xf32>
    %99 = tpu.matmul %7, %98, %cst_73 {dimension_numbers = #tpu.dot_dimension_numbers<[1], [0], [0], [1], [0, 0, 1, 1], [], []>} : vector<12x12xf32>, vector<12x1xf32>, vector<12x1xf32> -> vector<12x1xf32>
    %100 = vector.broadcast %81 : vector<1x1xf32> to vector<12x1xf32>
    %101 = arith.addf %99, %100 : vector<12x1xf32>
    %102 = math.tanh %101 : vector<12x1xf32>
    %c0_74 = arith.constant 0 : index
    %c0_75 = arith.constant 0 : index
    %103 = vector.load %arg5[%c0_74, %c0_75] : memref<65x16xf32, #tpu.memory_space<vmem>>, vector<65x16xf32>
    %c0_76 = arith.constant 0 : index
    %c0_77 = arith.constant 0 : index
    %104 = vector.load %arg6[%c0_76, %c0_77] : memref<1x16xf32, #tpu.memory_space<vmem>>, vector<1x16xf32>
    %c0_78 = arith.constant 0 : index
    %c0_79 = arith.constant 0 : index
    %105 = vector.load %arg7[%c0_78, %c0_79] : memref<80x32xf32, #tpu.memory_space<vmem>>, vector<80x32xf32>
    %c0_80 = arith.constant 0 : index
    %c0_81 = arith.constant 0 : index
    %106 = vector.load %arg8[%c0_80, %c0_81] : memref<1x32xf32, #tpu.memory_space<vmem>>, vector<1x32xf32>
    %c0_82 = arith.constant 0 : index
    %c0_83 = arith.constant 0 : index
    %107 = vector.load %arg9[%c0_82, %c0_83] : memref<32x32xf32, #tpu.memory_space<vmem>>, vector<32x32xf32>
    %c0_84 = arith.constant 0 : index
    %c0_85 = arith.constant 0 : index
    %108 = vector.load %arg10[%c0_84, %c0_85] : memref<1x32xf32, #tpu.memory_space<vmem>>, vector<1x32xf32>
    %c0_86 = arith.constant 0 : index
    %c0_87 = arith.constant 0 : index
    %109 = vector.load %arg11[%c0_86, %c0_87] : memref<32x1xf32, #tpu.memory_space<vmem>>, vector<32x1xf32>
    %c0_88 = arith.constant 0 : index
    %c0_89 = arith.constant 0 : index
    %110 = vector.load %arg12[%c0_88, %c0_89] : memref<1x1xf32, #tpu.memory_space<vmem>>, vector<1x1xf32>
    %111 = tpu.iota {dimensions = array<i32: 0>} : vector<12x12xi32>
    %112 = tpu.iota {dimensions = array<i32: 1>} : vector<12x12xi32>
    %113 = arith.cmpi eq, %111, %112 : vector<12x12xi32>
    %cst_90 = arith.constant 1.000000e+00 : f32
    %cst_91 = arith.constant 0.000000e+00 : f32
    %114 = vector.broadcast %cst_90 : f32 to vector<12x12xf32>
    %115 = vector.broadcast %cst_91 : f32 to vector<12x12xf32>
    %116 = arith.select %113, %114, %115 : vector<12x12xi1>, vector<12x12xf32>
    %117 = arith.cmpi slt, %111, %112 : vector<12x12xi32>
    %118 = tpu.iota {dimensions = array<i32: 0>} : vector<10x12xi32>
    %119 = arith.sitofp %118 : vector<10x12xi32> to vector<10x12xf32>
    %120 = tpu.concatenate %29, %58, %87 in 1 : vector<12x32xf32>, vector<12x32xf32>, vector<12x1xf32> -> vector<12x65xf32>
    %121 = vector.broadcast %87 : vector<12x1xf32> to vector<12x12xf32>
    %122 = arith.mulf %121, %116 : vector<12x12xf32>
    %cst_92 = arith.constant dense<0.000000e+00> : vector<12xf32>
    %123 = vector.multi_reduction <add>, %122, %cst_92 [0] : vector<12x12xf32> to vector<12xf32>
    %124 = vector.shape_cast %123 : vector<12xf32> to vector<1x12xf32>
    %125 = vector.broadcast %87 : vector<12x1xf32> to vector<12x12xf32>
    %126 = vector.broadcast %124 : vector<1x12xf32> to vector<12x12xf32>
    %127 = arith.cmpf ogt, %125, %126 : vector<12x12xf32>
    %128 = vector.broadcast %87 : vector<12x1xf32> to vector<12x12xf32>
    %129 = vector.broadcast %124 : vector<1x12xf32> to vector<12x12xf32>
    %130 = arith.cmpf oeq, %128, %129 : vector<12x12xf32>
    %131 = arith.andi %130, %117 : vector<12x12xi1>
    %132 = arith.ori %127, %131 : vector<12x12xi1>
    %133 = arith.extui %132 : vector<12x12xi1> to vector<12x12xi32>
    %134 = arith.sitofp %133 : vector<12x12xi32> to vector<12x12xf32>
    %cst_93 = arith.constant dense<0.000000e+00> : vector<12xf32>
    %135 = vector.multi_reduction <add>, %134, %cst_93 [0] : vector<12x12xf32> to vector<12xf32>
    %136 = vector.shape_cast %135 : vector<12xf32> to vector<1x12xf32>
    %137 = vector.broadcast %136 : vector<1x12xf32> to vector<10x12xf32>
    %138 = arith.cmpf oeq, %137, %119 : vector<10x12xf32>
    %cst_94 = arith.constant 1.000000e+00 : f32
    %cst_95 = arith.constant 0.000000e+00 : f32
    %139 = vector.broadcast %cst_94 : f32 to vector<10x12xf32>
    %140 = vector.broadcast %cst_95 : f32 to vector<10x12xf32>
    %141 = arith.select %138, %139, %140 : vector<10x12xi1>, vector<10x12xf32>
    %cst_96 = arith.constant dense<0.000000e+00> : vector<10x65xf32>
    %142 = tpu.matmul %141, %120, %cst_96 {dimension_numbers = #tpu.dot_dimension_numbers<[1], [0], [0], [1], [0, 0, 1, 1], [], []>} : vector<10x12xf32>, vector<12x65xf32>, vector<10x65xf32> -> vector<10x65xf32>
    %cst_97 = arith.constant dense<0.000000e+00> : vector<10x16xf32>
    %143 = tpu.matmul %142, %103, %cst_97 {dimension_numbers = #tpu.dot_dimension_numbers<[1], [0], [0], [1], [0, 0, 1, 1], [], []>} : vector<10x65xf32>, vector<65x16xf32>, vector<10x16xf32> -> vector<10x16xf32>
    %144 = vector.broadcast %104 : vector<1x16xf32> to vector<10x16xf32>
    %145 = arith.addf %143, %144 : vector<10x16xf32>
    %cst_98 = arith.constant 0.000000e+00 : f32
    %146 = vector.broadcast %cst_98 : f32 to vector<10x16xf32>
    %147 = arith.maximumf %145, %146 : vector<10x16xf32>
    %148 = vector.extract_strided_slice %147 {offsets = [0, 0], sizes = [1, 16], strides = [1, 1]} : vector<10x16xf32> to vector<1x16xf32>
    %149 = vector.extract_strided_slice %147 {offsets = [1, 0], sizes = [1, 16], strides = [1, 1]} : vector<10x16xf32> to vector<1x16xf32>
    %150 = arith.maximumf %148, %149 : vector<1x16xf32>
    %151 = vector.extract_strided_slice %147 {offsets = [2, 0], sizes = [1, 16], strides = [1, 1]} : vector<10x16xf32> to vector<1x16xf32>
    %152 = vector.extract_strided_slice %147 {offsets = [3, 0], sizes = [1, 16], strides = [1, 1]} : vector<10x16xf32> to vector<1x16xf32>
    %153 = arith.maximumf %151, %152 : vector<1x16xf32>
    %154 = vector.extract_strided_slice %147 {offsets = [4, 0], sizes = [1, 16], strides = [1, 1]} : vector<10x16xf32> to vector<1x16xf32>
    %155 = vector.extract_strided_slice %147 {offsets = [5, 0], sizes = [1, 16], strides = [1, 1]} : vector<10x16xf32> to vector<1x16xf32>
    %156 = arith.maximumf %154, %155 : vector<1x16xf32>
    %157 = vector.extract_strided_slice %147 {offsets = [6, 0], sizes = [1, 16], strides = [1, 1]} : vector<10x16xf32> to vector<1x16xf32>
    %158 = vector.extract_strided_slice %147 {offsets = [7, 0], sizes = [1, 16], strides = [1, 1]} : vector<10x16xf32> to vector<1x16xf32>
    %159 = arith.maximumf %157, %158 : vector<1x16xf32>
    %160 = vector.extract_strided_slice %147 {offsets = [8, 0], sizes = [1, 16], strides = [1, 1]} : vector<10x16xf32> to vector<1x16xf32>
    %161 = vector.extract_strided_slice %147 {offsets = [9, 0], sizes = [1, 16], strides = [1, 1]} : vector<10x16xf32> to vector<1x16xf32>
    %162 = arith.maximumf %160, %161 : vector<1x16xf32>
    %163 = tpu.concatenate %150, %153, %156, %159, %162 in 1 : vector<1x16xf32>, vector<1x16xf32>, vector<1x16xf32>, vector<1x16xf32>, vector<1x16xf32> -> vector<1x80xf32>
    %cst_99 = arith.constant dense<0.000000e+00> : vector<1x32xf32>
    %164 = tpu.matmul %163, %105, %cst_99 {dimension_numbers = #tpu.dot_dimension_numbers<[1], [0], [0], [1], [0, 0, 1, 1], [], []>} : vector<1x80xf32>, vector<80x32xf32>, vector<1x32xf32> -> vector<1x32xf32>
    %165 = arith.addf %164, %106 : vector<1x32xf32>
    %cst_100 = arith.constant 0.000000e+00 : f32
    %166 = vector.broadcast %cst_100 : f32 to vector<1x32xf32>
    %167 = arith.maximumf %165, %166 : vector<1x32xf32>
    %cst_101 = arith.constant dense<0.000000e+00> : vector<1x32xf32>
    %168 = tpu.matmul %167, %107, %cst_101 {dimension_numbers = #tpu.dot_dimension_numbers<[1], [0], [0], [1], [0, 0, 1, 1], [], []>} : vector<1x32xf32>, vector<32x32xf32>, vector<1x32xf32> -> vector<1x32xf32>
    %169 = arith.addf %108, %168 : vector<1x32xf32>
    %cst_102 = arith.constant 0.000000e+00 : f32
    %170 = vector.broadcast %cst_102 : f32 to vector<1x32xf32>
    %171 = arith.maximumf %169, %170 : vector<1x32xf32>
    %cst_103 = arith.constant dense<0.000000e+00> : vector<1x1xf32>
    %172 = tpu.matmul %171, %109, %cst_103 {dimension_numbers = #tpu.dot_dimension_numbers<[1], [0], [0], [1], [0, 0, 1, 1], [], []>} : vector<1x32xf32>, vector<32x1xf32>, vector<1x1xf32> -> vector<1x1xf32>
    %173 = arith.addf %172, %110 : vector<1x1xf32>
    %c0_104 = arith.constant 0 : index
    %c0_105 = arith.constant 0 : index
    %c0_106 = arith.constant 0 : index
    %174 = vector.load %arg13[%c0_104, %c0_105, %c0_106] : memref<4x1x1xf32, #tpu.memory_space<vmem>>, vector<1x1x1xf32>
    %175 = vector.shape_cast %174 : vector<1x1x1xf32> to vector<1x1xf32>
    %176 = vector.shape_cast %173 : vector<1x1xf32> to vector<1x1x1xf32>
    tpu.vector_store %arg13[%c0_104, %c0_105, %c0_106], %176 {strides = array<i32>} : memref<4x1x1xf32, #tpu.memory_space<vmem>>, vector<1x1x1xf32>,
    %177 = tpu.concatenate %35, %64, %92 in 1 : vector<12x32xf32>, vector<12x32xf32>, vector<12x1xf32> -> vector<12x65xf32>
    %178 = vector.broadcast %92 : vector<12x1xf32> to vector<12x12xf32>
    %179 = arith.mulf %178, %116 : vector<12x12xf32>
    %cst_107 = arith.constant dense<0.000000e+00> : vector<12xf32>
    %180 = vector.multi_reduction <add>, %179, %cst_107 [0] : vector<12x12xf32> to vector<12xf32>
    %181 = vector.shape_cast %180 : vector<12xf32> to vector<1x12xf32>
    %182 = vector.broadcast %92 : vector<12x1xf32> to vector<12x12xf32>
    %183 = vector.broadcast %181 : vector<1x12xf32> to vector<12x12xf32>
    %184 = arith.cmpf ogt, %182, %183 : vector<12x12xf32>
    %185 = vector.broadcast %92 : vector<12x1xf32> to vector<12x12xf32>
    %186 = vector.broadcast %181 : vector<1x12xf32> to vector<12x12xf32>
    %187 = arith.cmpf oeq, %185, %186 : vector<12x12xf32>
    %188 = arith.andi %187, %117 : vector<12x12xi1>
    %189 = arith.ori %184, %188 : vector<12x12xi1>
    %190 = arith.extui %189 : vector<12x12xi1> to vector<12x12xi32>
    %191 = arith.sitofp %190 : vector<12x12xi32> to vector<12x12xf32>
    %cst_108 = arith.constant dense<0.000000e+00> : vector<12xf32>
    %192 = vector.multi_reduction <add>, %191, %cst_108 [0] : vector<12x12xf32> to vector<12xf32>
    %193 = vector.shape_cast %192 : vector<12xf32> to vector<1x12xf32>
    %194 = vector.broadcast %193 : vector<1x12xf32> to vector<10x12xf32>
    %195 = arith.cmpf oeq, %194, %119 : vector<10x12xf32>
    %cst_109 = arith.constant 1.000000e+00 : f32
    %cst_110 = arith.constant 0.000000e+00 : f32
    %196 = vector.broadcast %cst_109 : f32 to vector<10x12xf32>
    %197 = vector.broadcast %cst_110 : f32 to vector<10x12xf32>
    %198 = arith.select %195, %196, %197 : vector<10x12xi1>, vector<10x12xf32>
    %cst_111 = arith.constant dense<0.000000e+00> : vector<10x65xf32>
    %199 = tpu.matmul %198, %177, %cst_111 {dimension_numbers = #tpu.dot_dimension_numbers<[1], [0], [0], [1], [0, 0, 1, 1], [], []>} : vector<10x12xf32>, vector<12x65xf32>, vector<10x65xf32> -> vector<10x65xf32>
    %cst_112 = arith.constant dense<0.000000e+00> : vector<10x16xf32>
    %200 = tpu.matmul %199, %103, %cst_112 {dimension_numbers = #tpu.dot_dimension_numbers<[1], [0], [0], [1], [0, 0, 1, 1], [], []>} : vector<10x65xf32>, vector<65x16xf32>, vector<10x16xf32> -> vector<10x16xf32>
    %201 = vector.broadcast %104 : vector<1x16xf32> to vector<10x16xf32>
    %202 = arith.addf %200, %201 : vector<10x16xf32>
    %cst_113 = arith.constant 0.000000e+00 : f32
    %203 = vector.broadcast %cst_113 : f32 to vector<10x16xf32>
    %204 = arith.maximumf %202, %203 : vector<10x16xf32>
    %205 = vector.extract_strided_slice %204 {offsets = [0, 0], sizes = [1, 16], strides = [1, 1]} : vector<10x16xf32> to vector<1x16xf32>
    %206 = vector.extract_strided_slice %204 {offsets = [1, 0], sizes = [1, 16], strides = [1, 1]} : vector<10x16xf32> to vector<1x16xf32>
    %207 = arith.maximumf %205, %206 : vector<1x16xf32>
    %208 = vector.extract_strided_slice %204 {offsets = [2, 0], sizes = [1, 16], strides = [1, 1]} : vector<10x16xf32> to vector<1x16xf32>
    %209 = vector.extract_strided_slice %204 {offsets = [3, 0], sizes = [1, 16], strides = [1, 1]} : vector<10x16xf32> to vector<1x16xf32>
    %210 = arith.maximumf %208, %209 : vector<1x16xf32>
    %211 = vector.extract_strided_slice %204 {offsets = [4, 0], sizes = [1, 16], strides = [1, 1]} : vector<10x16xf32> to vector<1x16xf32>
    %212 = vector.extract_strided_slice %204 {offsets = [5, 0], sizes = [1, 16], strides = [1, 1]} : vector<10x16xf32> to vector<1x16xf32>
    %213 = arith.maximumf %211, %212 : vector<1x16xf32>
    %214 = vector.extract_strided_slice %204 {offsets = [6, 0], sizes = [1, 16], strides = [1, 1]} : vector<10x16xf32> to vector<1x16xf32>
    %215 = vector.extract_strided_slice %204 {offsets = [7, 0], sizes = [1, 16], strides = [1, 1]} : vector<10x16xf32> to vector<1x16xf32>
    %216 = arith.maximumf %214, %215 : vector<1x16xf32>
    %217 = vector.extract_strided_slice %204 {offsets = [8, 0], sizes = [1, 16], strides = [1, 1]} : vector<10x16xf32> to vector<1x16xf32>
    %218 = vector.extract_strided_slice %204 {offsets = [9, 0], sizes = [1, 16], strides = [1, 1]} : vector<10x16xf32> to vector<1x16xf32>
    %219 = arith.maximumf %217, %218 : vector<1x16xf32>
    %220 = tpu.concatenate %207, %210, %213, %216, %219 in 1 : vector<1x16xf32>, vector<1x16xf32>, vector<1x16xf32>, vector<1x16xf32>, vector<1x16xf32> -> vector<1x80xf32>
    %cst_114 = arith.constant dense<0.000000e+00> : vector<1x32xf32>
    %221 = tpu.matmul %220, %105, %cst_114 {dimension_numbers = #tpu.dot_dimension_numbers<[1], [0], [0], [1], [0, 0, 1, 1], [], []>} : vector<1x80xf32>, vector<80x32xf32>, vector<1x32xf32> -> vector<1x32xf32>
    %222 = arith.addf %221, %106 : vector<1x32xf32>
    %cst_115 = arith.constant 0.000000e+00 : f32
    %223 = vector.broadcast %cst_115 : f32 to vector<1x32xf32>
    %224 = arith.maximumf %222, %223 : vector<1x32xf32>
    %cst_116 = arith.constant dense<0.000000e+00> : vector<1x32xf32>
    %225 = tpu.matmul %224, %107, %cst_116 {dimension_numbers = #tpu.dot_dimension_numbers<[1], [0], [0], [1], [0, 0, 1, 1], [], []>} : vector<1x32xf32>, vector<32x32xf32>, vector<1x32xf32> -> vector<1x32xf32>
    %226 = arith.addf %108, %225 : vector<1x32xf32>
    %cst_117 = arith.constant 0.000000e+00 : f32
    %227 = vector.broadcast %cst_117 : f32 to vector<1x32xf32>
    %228 = arith.maximumf %226, %227 : vector<1x32xf32>
    %cst_118 = arith.constant dense<0.000000e+00> : vector<1x1xf32>
    %229 = tpu.matmul %228, %109, %cst_118 {dimension_numbers = #tpu.dot_dimension_numbers<[1], [0], [0], [1], [0, 0, 1, 1], [], []>} : vector<1x32xf32>, vector<32x1xf32>, vector<1x1xf32> -> vector<1x1xf32>
    %230 = arith.addf %229, %110 : vector<1x1xf32>
    %c1_119 = arith.constant 1 : index
    %c0_120 = arith.constant 0 : index
    %c0_121 = arith.constant 0 : index
    %231 = vector.load %arg13[%c1_119, %c0_120, %c0_121] : memref<4x1x1xf32, #tpu.memory_space<vmem>>, vector<1x1x1xf32>
    %232 = vector.shape_cast %231 : vector<1x1x1xf32> to vector<1x1xf32>
    %233 = vector.shape_cast %230 : vector<1x1xf32> to vector<1x1x1xf32>
    tpu.vector_store %arg13[%c1_119, %c0_120, %c0_121], %233 {strides = array<i32>} : memref<4x1x1xf32, #tpu.memory_space<vmem>>, vector<1x1x1xf32>,
    %234 = tpu.concatenate %41, %70, %97 in 1 : vector<12x32xf32>, vector<12x32xf32>, vector<12x1xf32> -> vector<12x65xf32>
    %235 = vector.broadcast %97 : vector<12x1xf32> to vector<12x12xf32>
    %236 = arith.mulf %235, %116 : vector<12x12xf32>
    %cst_122 = arith.constant dense<0.000000e+00> : vector<12xf32>
    %237 = vector.multi_reduction <add>, %236, %cst_122 [0] : vector<12x12xf32> to vector<12xf32>
    %238 = vector.shape_cast %237 : vector<12xf32> to vector<1x12xf32>
    %239 = vector.broadcast %97 : vector<12x1xf32> to vector<12x12xf32>
    %240 = vector.broadcast %238 : vector<1x12xf32> to vector<12x12xf32>
    %241 = arith.cmpf ogt, %239, %240 : vector<12x12xf32>
    %242 = vector.broadcast %97 : vector<12x1xf32> to vector<12x12xf32>
    %243 = vector.broadcast %238 : vector<1x12xf32> to vector<12x12xf32>
    %244 = arith.cmpf oeq, %242, %243 : vector<12x12xf32>
    %245 = arith.andi %244, %117 : vector<12x12xi1>
    %246 = arith.ori %241, %245 : vector<12x12xi1>
    %247 = arith.extui %246 : vector<12x12xi1> to vector<12x12xi32>
    %248 = arith.sitofp %247 : vector<12x12xi32> to vector<12x12xf32>
    %cst_123 = arith.constant dense<0.000000e+00> : vector<12xf32>
    %249 = vector.multi_reduction <add>, %248, %cst_123 [0] : vector<12x12xf32> to vector<12xf32>
    %250 = vector.shape_cast %249 : vector<12xf32> to vector<1x12xf32>
    %251 = vector.broadcast %250 : vector<1x12xf32> to vector<10x12xf32>
    %252 = arith.cmpf oeq, %251, %119 : vector<10x12xf32>
    %cst_124 = arith.constant 1.000000e+00 : f32
    %cst_125 = arith.constant 0.000000e+00 : f32
    %253 = vector.broadcast %cst_124 : f32 to vector<10x12xf32>
    %254 = vector.broadcast %cst_125 : f32 to vector<10x12xf32>
    %255 = arith.select %252, %253, %254 : vector<10x12xi1>, vector<10x12xf32>
    %cst_126 = arith.constant dense<0.000000e+00> : vector<10x65xf32>
    %256 = tpu.matmul %255, %234, %cst_126 {dimension_numbers = #tpu.dot_dimension_numbers<[1], [0], [0], [1], [0, 0, 1, 1], [], []>} : vector<10x12xf32>, vector<12x65xf32>, vector<10x65xf32> -> vector<10x65xf32>
    %cst_127 = arith.constant dense<0.000000e+00> : vector<10x16xf32>
    %257 = tpu.matmul %256, %103, %cst_127 {dimension_numbers = #tpu.dot_dimension_numbers<[1], [0], [0], [1], [0, 0, 1, 1], [], []>} : vector<10x65xf32>, vector<65x16xf32>, vector<10x16xf32> -> vector<10x16xf32>
    %258 = vector.broadcast %104 : vector<1x16xf32> to vector<10x16xf32>
    %259 = arith.addf %257, %258 : vector<10x16xf32>
    %cst_128 = arith.constant 0.000000e+00 : f32
    %260 = vector.broadcast %cst_128 : f32 to vector<10x16xf32>
    %261 = arith.maximumf %259, %260 : vector<10x16xf32>
    %262 = vector.extract_strided_slice %261 {offsets = [0, 0], sizes = [1, 16], strides = [1, 1]} : vector<10x16xf32> to vector<1x16xf32>
    %263 = vector.extract_strided_slice %261 {offsets = [1, 0], sizes = [1, 16], strides = [1, 1]} : vector<10x16xf32> to vector<1x16xf32>
    %264 = arith.maximumf %262, %263 : vector<1x16xf32>
    %265 = vector.extract_strided_slice %261 {offsets = [2, 0], sizes = [1, 16], strides = [1, 1]} : vector<10x16xf32> to vector<1x16xf32>
    %266 = vector.extract_strided_slice %261 {offsets = [3, 0], sizes = [1, 16], strides = [1, 1]} : vector<10x16xf32> to vector<1x16xf32>
    %267 = arith.maximumf %265, %266 : vector<1x16xf32>
    %268 = vector.extract_strided_slice %261 {offsets = [4, 0], sizes = [1, 16], strides = [1, 1]} : vector<10x16xf32> to vector<1x16xf32>
    %269 = vector.extract_strided_slice %261 {offsets = [5, 0], sizes = [1, 16], strides = [1, 1]} : vector<10x16xf32> to vector<1x16xf32>
    %270 = arith.maximumf %268, %269 : vector<1x16xf32>
    %271 = vector.extract_strided_slice %261 {offsets = [6, 0], sizes = [1, 16], strides = [1, 1]} : vector<10x16xf32> to vector<1x16xf32>
    %272 = vector.extract_strided_slice %261 {offsets = [7, 0], sizes = [1, 16], strides = [1, 1]} : vector<10x16xf32> to vector<1x16xf32>
    %273 = arith.maximumf %271, %272 : vector<1x16xf32>
    %274 = vector.extract_strided_slice %261 {offsets = [8, 0], sizes = [1, 16], strides = [1, 1]} : vector<10x16xf32> to vector<1x16xf32>
    %275 = vector.extract_strided_slice %261 {offsets = [9, 0], sizes = [1, 16], strides = [1, 1]} : vector<10x16xf32> to vector<1x16xf32>
    %276 = arith.maximumf %274, %275 : vector<1x16xf32>
    %277 = tpu.concatenate %264, %267, %270, %273, %276 in 1 : vector<1x16xf32>, vector<1x16xf32>, vector<1x16xf32>, vector<1x16xf32>, vector<1x16xf32> -> vector<1x80xf32>
    %cst_129 = arith.constant dense<0.000000e+00> : vector<1x32xf32>
    %278 = tpu.matmul %277, %105, %cst_129 {dimension_numbers = #tpu.dot_dimension_numbers<[1], [0], [0], [1], [0, 0, 1, 1], [], []>} : vector<1x80xf32>, vector<80x32xf32>, vector<1x32xf32> -> vector<1x32xf32>
    %279 = arith.addf %278, %106 : vector<1x32xf32>
    %cst_130 = arith.constant 0.000000e+00 : f32
    %280 = vector.broadcast %cst_130 : f32 to vector<1x32xf32>
    %281 = arith.maximumf %279, %280 : vector<1x32xf32>
    %cst_131 = arith.constant dense<0.000000e+00> : vector<1x32xf32>
    %282 = tpu.matmul %281, %107, %cst_131 {dimension_numbers = #tpu.dot_dimension_numbers<[1], [0], [0], [1], [0, 0, 1, 1], [], []>} : vector<1x32xf32>, vector<32x32xf32>, vector<1x32xf32> -> vector<1x32xf32>
    %283 = arith.addf %108, %282 : vector<1x32xf32>
    %cst_132 = arith.constant 0.000000e+00 : f32
    %284 = vector.broadcast %cst_132 : f32 to vector<1x32xf32>
    %285 = arith.maximumf %283, %284 : vector<1x32xf32>
    %cst_133 = arith.constant dense<0.000000e+00> : vector<1x1xf32>
    %286 = tpu.matmul %285, %109, %cst_133 {dimension_numbers = #tpu.dot_dimension_numbers<[1], [0], [0], [1], [0, 0, 1, 1], [], []>} : vector<1x32xf32>, vector<32x1xf32>, vector<1x1xf32> -> vector<1x1xf32>
    %287 = arith.addf %286, %110 : vector<1x1xf32>
    %c2_134 = arith.constant 2 : index
    %c0_135 = arith.constant 0 : index
    %c0_136 = arith.constant 0 : index
    %288 = vector.load %arg13[%c2_134, %c0_135, %c0_136] : memref<4x1x1xf32, #tpu.memory_space<vmem>>, vector<1x1x1xf32>
    %289 = vector.shape_cast %288 : vector<1x1x1xf32> to vector<1x1xf32>
    %290 = vector.shape_cast %287 : vector<1x1xf32> to vector<1x1x1xf32>
    tpu.vector_store %arg13[%c2_134, %c0_135, %c0_136], %290 {strides = array<i32>} : memref<4x1x1xf32, #tpu.memory_space<vmem>>, vector<1x1x1xf32>,
    %291 = tpu.concatenate %47, %76, %102 in 1 : vector<12x32xf32>, vector<12x32xf32>, vector<12x1xf32> -> vector<12x65xf32>
    %292 = vector.broadcast %102 : vector<12x1xf32> to vector<12x12xf32>
    %293 = arith.mulf %292, %116 : vector<12x12xf32>
    %cst_137 = arith.constant dense<0.000000e+00> : vector<12xf32>
    %294 = vector.multi_reduction <add>, %293, %cst_137 [0] : vector<12x12xf32> to vector<12xf32>
    %295 = vector.shape_cast %294 : vector<12xf32> to vector<1x12xf32>
    %296 = vector.broadcast %102 : vector<12x1xf32> to vector<12x12xf32>
    %297 = vector.broadcast %295 : vector<1x12xf32> to vector<12x12xf32>
    %298 = arith.cmpf ogt, %296, %297 : vector<12x12xf32>
    %299 = vector.broadcast %102 : vector<12x1xf32> to vector<12x12xf32>
    %300 = vector.broadcast %295 : vector<1x12xf32> to vector<12x12xf32>
    %301 = arith.cmpf oeq, %299, %300 : vector<12x12xf32>
    %302 = arith.andi %301, %117 : vector<12x12xi1>
    %303 = arith.ori %298, %302 : vector<12x12xi1>
    %304 = arith.extui %303 : vector<12x12xi1> to vector<12x12xi32>
    %305 = arith.sitofp %304 : vector<12x12xi32> to vector<12x12xf32>
    %cst_138 = arith.constant dense<0.000000e+00> : vector<12xf32>
    %306 = vector.multi_reduction <add>, %305, %cst_138 [0] : vector<12x12xf32> to vector<12xf32>
    %307 = vector.shape_cast %306 : vector<12xf32> to vector<1x12xf32>
    %308 = vector.broadcast %307 : vector<1x12xf32> to vector<10x12xf32>
    %309 = arith.cmpf oeq, %308, %119 : vector<10x12xf32>
    %cst_139 = arith.constant 1.000000e+00 : f32
    %cst_140 = arith.constant 0.000000e+00 : f32
    %310 = vector.broadcast %cst_139 : f32 to vector<10x12xf32>
    %311 = vector.broadcast %cst_140 : f32 to vector<10x12xf32>
    %312 = arith.select %309, %310, %311 : vector<10x12xi1>, vector<10x12xf32>
    %cst_141 = arith.constant dense<0.000000e+00> : vector<10x65xf32>
    %313 = tpu.matmul %312, %291, %cst_141 {dimension_numbers = #tpu.dot_dimension_numbers<[1], [0], [0], [1], [0, 0, 1, 1], [], []>} : vector<10x12xf32>, vector<12x65xf32>, vector<10x65xf32> -> vector<10x65xf32>
    %cst_142 = arith.constant dense<0.000000e+00> : vector<10x16xf32>
    %314 = tpu.matmul %313, %103, %cst_142 {dimension_numbers = #tpu.dot_dimension_numbers<[1], [0], [0], [1], [0, 0, 1, 1], [], []>} : vector<10x65xf32>, vector<65x16xf32>, vector<10x16xf32> -> vector<10x16xf32>
    %315 = vector.broadcast %104 : vector<1x16xf32> to vector<10x16xf32>
    %316 = arith.addf %314, %315 : vector<10x16xf32>
    %cst_143 = arith.constant 0.000000e+00 : f32
    %317 = vector.broadcast %cst_143 : f32 to vector<10x16xf32>
    %318 = arith.maximumf %316, %317 : vector<10x16xf32>
    %319 = vector.extract_strided_slice %318 {offsets = [0, 0], sizes = [1, 16], strides = [1, 1]} : vector<10x16xf32> to vector<1x16xf32>
    %320 = vector.extract_strided_slice %318 {offsets = [1, 0], sizes = [1, 16], strides = [1, 1]} : vector<10x16xf32> to vector<1x16xf32>
    %321 = arith.maximumf %319, %320 : vector<1x16xf32>
    %322 = vector.extract_strided_slice %318 {offsets = [2, 0], sizes = [1, 16], strides = [1, 1]} : vector<10x16xf32> to vector<1x16xf32>
    %323 = vector.extract_strided_slice %318 {offsets = [3, 0], sizes = [1, 16], strides = [1, 1]} : vector<10x16xf32> to vector<1x16xf32>
    %324 = arith.maximumf %322, %323 : vector<1x16xf32>
    %325 = vector.extract_strided_slice %318 {offsets = [4, 0], sizes = [1, 16], strides = [1, 1]} : vector<10x16xf32> to vector<1x16xf32>
    %326 = vector.extract_strided_slice %318 {offsets = [5, 0], sizes = [1, 16], strides = [1, 1]} : vector<10x16xf32> to vector<1x16xf32>
    %327 = arith.maximumf %325, %326 : vector<1x16xf32>
    %328 = vector.extract_strided_slice %318 {offsets = [6, 0], sizes = [1, 16], strides = [1, 1]} : vector<10x16xf32> to vector<1x16xf32>
    %329 = vector.extract_strided_slice %318 {offsets = [7, 0], sizes = [1, 16], strides = [1, 1]} : vector<10x16xf32> to vector<1x16xf32>
    %330 = arith.maximumf %328, %329 : vector<1x16xf32>
    %331 = vector.extract_strided_slice %318 {offsets = [8, 0], sizes = [1, 16], strides = [1, 1]} : vector<10x16xf32> to vector<1x16xf32>
    %332 = vector.extract_strided_slice %318 {offsets = [9, 0], sizes = [1, 16], strides = [1, 1]} : vector<10x16xf32> to vector<1x16xf32>
    %333 = arith.maximumf %331, %332 : vector<1x16xf32>
    %334 = tpu.concatenate %321, %324, %327, %330, %333 in 1 : vector<1x16xf32>, vector<1x16xf32>, vector<1x16xf32>, vector<1x16xf32>, vector<1x16xf32> -> vector<1x80xf32>
    %cst_144 = arith.constant dense<0.000000e+00> : vector<1x32xf32>
    %335 = tpu.matmul %334, %105, %cst_144 {dimension_numbers = #tpu.dot_dimension_numbers<[1], [0], [0], [1], [0, 0, 1, 1], [], []>} : vector<1x80xf32>, vector<80x32xf32>, vector<1x32xf32> -> vector<1x32xf32>
    %336 = arith.addf %335, %106 : vector<1x32xf32>
    %cst_145 = arith.constant 0.000000e+00 : f32
    %337 = vector.broadcast %cst_145 : f32 to vector<1x32xf32>
    %338 = arith.maximumf %336, %337 : vector<1x32xf32>
    %cst_146 = arith.constant dense<0.000000e+00> : vector<1x32xf32>
    %339 = tpu.matmul %338, %107, %cst_146 {dimension_numbers = #tpu.dot_dimension_numbers<[1], [0], [0], [1], [0, 0, 1, 1], [], []>} : vector<1x32xf32>, vector<32x32xf32>, vector<1x32xf32> -> vector<1x32xf32>
    %340 = arith.addf %108, %339 : vector<1x32xf32>
    %cst_147 = arith.constant 0.000000e+00 : f32
    %341 = vector.broadcast %cst_147 : f32 to vector<1x32xf32>
    %342 = arith.maximumf %340, %341 : vector<1x32xf32>
    %cst_148 = arith.constant dense<0.000000e+00> : vector<1x1xf32>
    %343 = tpu.matmul %342, %109, %cst_148 {dimension_numbers = #tpu.dot_dimension_numbers<[1], [0], [0], [1], [0, 0, 1, 1], [], []>} : vector<1x32xf32>, vector<32x1xf32>, vector<1x1xf32> -> vector<1x1xf32>
    %344 = arith.addf %343, %110 : vector<1x1xf32>
    %c3_149 = arith.constant 3 : index
    %c0_150 = arith.constant 0 : index
    %c0_151 = arith.constant 0 : index
    %345 = vector.load %arg13[%c3_149, %c0_150, %c0_151] : memref<4x1x1xf32, #tpu.memory_space<vmem>>, vector<1x1x1xf32>
    %346 = vector.shape_cast %345 : vector<1x1x1xf32> to vector<1x1xf32>
    %347 = vector.shape_cast %344 : vector<1x1xf32> to vector<1x1x1xf32>
    tpu.vector_store %arg13[%c3_149, %c0_150, %c0_151], %347 {strides = array<i32>} : memref<4x1x1xf32, #tpu.memory_space<vmem>>, vector<1x1x1xf32>,
    return
  }
  func.func @transform_0(%arg0: i32) -> (i32, i32, i32) {
    %c0_i32 = arith.constant 0 : i32
    %c0_i32_0 = arith.constant 0 : i32
    %c0_i32_1 = arith.constant 0 : i32
    return %arg0, %c0_i32, %c0_i32_0 : i32, i32, i32
  }
  func.func @transform_1(%arg0: i32) -> (i32, i32, i32) {
    %c0_i32 = arith.constant 0 : i32
    %c0_i32_0 = arith.constant 0 : i32
    %c0_i32_1 = arith.constant 0 : i32
    return %arg0, %c0_i32, %c0_i32_0 : i32, i32, i32
  }
  func.func @transform_2(%arg0: i32) -> (i32, i32, i32) {
    %c0_i32 = arith.constant 0 : i32
    %c0_i32_0 = arith.constant 0 : i32
    %c0_i32_1 = arith.constant 0 : i32
    %c0_i32_2 = arith.constant 0 : i32
    return %c0_i32, %c0_i32_0, %c0_i32_1 : i32, i32, i32
  }
  func.func @transform_3(%arg0: i32) -> (i32, i32) {
    %c0_i32 = arith.constant 0 : i32
    %c0_i32_0 = arith.constant 0 : i32
    %c0_i32_1 = arith.constant 0 : i32
    return %c0_i32, %c0_i32_0 : i32, i32
  }
  func.func @transform_4(%arg0: i32) -> (i32, i32) {
    %c0_i32 = arith.constant 0 : i32
    %c0_i32_0 = arith.constant 0 : i32
    %c0_i32_1 = arith.constant 0 : i32
    return %c0_i32, %c0_i32_0 : i32, i32
  }
  func.func @transform_5(%arg0: i32) -> (i32, i32) {
    %c0_i32 = arith.constant 0 : i32
    %c0_i32_0 = arith.constant 0 : i32
    %c0_i32_1 = arith.constant 0 : i32
    return %c0_i32, %c0_i32_0 : i32, i32
  }
  func.func @transform_6(%arg0: i32) -> (i32, i32) {
    %c0_i32 = arith.constant 0 : i32
    %c0_i32_0 = arith.constant 0 : i32
    %c0_i32_1 = arith.constant 0 : i32
    return %c0_i32, %c0_i32_0 : i32, i32
  }
  func.func @transform_7(%arg0: i32) -> (i32, i32) {
    %c0_i32 = arith.constant 0 : i32
    %c0_i32_0 = arith.constant 0 : i32
    %c0_i32_1 = arith.constant 0 : i32
    return %c0_i32, %c0_i32_0 : i32, i32
  }
  func.func @transform_8(%arg0: i32) -> (i32, i32) {
    %c0_i32 = arith.constant 0 : i32
    %c0_i32_0 = arith.constant 0 : i32
    %c0_i32_1 = arith.constant 0 : i32
    return %c0_i32, %c0_i32_0 : i32, i32
  }
  func.func @transform_9(%arg0: i32) -> (i32, i32) {
    %c0_i32 = arith.constant 0 : i32
    %c0_i32_0 = arith.constant 0 : i32
    %c0_i32_1 = arith.constant 0 : i32
    return %c0_i32, %c0_i32_0 : i32, i32
  }
  func.func @transform_10(%arg0: i32) -> (i32, i32) {
    %c0_i32 = arith.constant 0 : i32
    %c0_i32_0 = arith.constant 0 : i32
    %c0_i32_1 = arith.constant 0 : i32
    return %c0_i32, %c0_i32_0 : i32, i32
  }
  func.func @transform_11(%arg0: i32) -> (i32, i32) {
    %c0_i32 = arith.constant 0 : i32
    %c0_i32_0 = arith.constant 0 : i32
    %c0_i32_1 = arith.constant 0 : i32
    return %c0_i32, %c0_i32_0 : i32, i32
  }
  func.func @transform_12(%arg0: i32) -> (i32, i32, i32) {
    %c0_i32 = arith.constant 0 : i32
    %c0_i32_0 = arith.constant 0 : i32
    %c0_i32_1 = arith.constant 0 : i32
    return %arg0, %c0_i32, %c0_i32_0 : i32, i32, i32
  }
}

</mosaic_0001>

<bundles_post_ra>
// kernel: tpu_custom_call.1
= control target key start
LH: loop header
LB: loop body
LE: loop exit
PB: predicated region body
PF: predicated region fallthrough
CT: control target
= control target key end

     0   :  { %vm103_vm0 = vcmask 1043456   ;;  %vm56_vm1 = vcmask 162816   ;;  %vm58_vm2 = vcmask 158720   ;;  %vm208_vm3 = vcmask 97280   ;;  %s4342_s30 = smov 64   ;;  %s4348_s23 = smov 48   ;;  %s5379_s2 = inlined_call_operand.vmem [shape: f32[3,32,32], index: 2, kind: input, shape index: {}]   ;;  %s5380_s1 = inlined_call_operand.vmem [shape: f32[4,12,20], index: 1, kind: input, shape index: {}]   ;;  %s5381_s0 = inlined_call_operand.vmem [shape: f32[4,12,12], index: 0, kind: input, shape index: {}]   ;;  %s5382_s3 = inlined_call_operand.vmem [shape: f32[1,65], index: 3, kind: input, shape index: {}]   ;;  %s5383_s4 = inlined_call_operand.vmem [shape: f32[65,16], index: 4, kind: input, shape index: {}]   ;;  %s5384_s6 = inlined_call_operand.vmem [shape: f32[80,32], index: 6, kind: input, shape index: {}]   ;;  %s5385_s5 = inlined_call_operand.vmem [shape: f32[1,16], index: 5, kind: input, shape index: {}]   ;;  %s5386_s8 = inlined_call_operand.vmem [shape: f32[32,32], index: 8, kind: input, shape index: {}]   ;;  %s5387_s10 = inlined_call_operand.vmem [shape: f32[32,1], index: 10, kind: input, shape index: {}]   ;;  %s5388_s7 = inlined_call_operand.vmem [shape: f32[1,32], index: 7, kind: input, shape index: {}]   ;;  %s5389_s11 = inlined_call_operand.<no memory space> [shape: f32[1,1], index: 11, kind: input, shape index: {}]   ;;  %s5390_s9 = inlined_call_operand.vmem [shape: f32[1,32], index: 9, kind: input, shape index: {}]   ;;  %s5391_s12 = inlined_call_operand.vmem [shape: f32[4,1,1], index: 12, kind: output, shape index: {}]  }
   0x1   :  { %v83_v0 = vld [vmem:[%s5379_s2 + $0x10] sm:$0xf]  ;;  %v82_v1 = vld [vmem:[%s5379_s2 + $0x8] sm:$0xff]  ;;  %v81_v2 = vld [vmem:[%s5379_s2] sm:$0xff]  ;;  %vm297_vm4 = vcmask 257024   ;;  %vm295_vm5 = vcmask 261120  }
   0x2   :  { %3848 = vmatprep.subr.msk.mxu0 %vm103_vm0, %v83_v0  ;;  %v54_v3 = vld [vmem:[%s5380_s1] sm:$0xff]  ;;  %v55_v4 = vld [vmem:[%s5380_s1 + $0x8] sm:$0xf]  ;;  %v3507_v5 = vld [vmem:[%s5380_s1 + $0x10] sm:$0xff]  ;;  %vm5402_vm6 = vcmask 1040384   ;;  %vm1577_vm9 = vcmask 93184  }
   0x3   :  { %3849 = vmatpush3.msk.msra.mxu0 %vm103_vm0, %v83_v0  ;;  %57 = vst.msk [vmem:[#allocation2] sm:$0xff] %vm56_vm1, %v54_v3  ;;  %63 = vst.msk [vmem:[#allocation2 + $0xc] sm:$0xff] %vm56_vm1, %v3507_v5  ;;  %v3508_v6 = vld [vmem:[%s5380_s1 + $0x18] sm:$0xf]  ;;  %v3509_v7 = vld [vmem:[%s5380_s1 + $0x20] sm:$0xff]  ;;  %vm1563_vm10 = vcmask 523264  }
   0x4   :  { %59 = vst.msk [vmem:[#allocation2 + $0x8] sm:$0xf] %vm58_vm2, %v55_v4  ;;  %v3510_v8 = vld [vmem:[%s5380_s1 + $0x28] sm:$0xf]  ;;  %3850 = vmatprep.subr.mxu0 %v82_v1  ;;  %64 = vst.msk [vmem:[#allocation2 + $0x14] sm:$0xf] %vm58_vm2, %v3508_v6 }
   0x5   :  { %68 = vst.msk [vmem:[#allocation2 + $0x18] sm:$0xff] %vm56_vm1, %v3509_v7  ;;  %v3511_v9 = vld [vmem:[%s5380_s1 + $0x30] sm:$0xff]  ;;  %v3512_v10 = vld [vmem:[%s5380_s1 + $0x38] sm:$0xf]  ;;  %3851 = vmatpush3.msra.mxu0 %v82_v1  ;;  %v4466_v17 = vld [vmem:[%s5381_s0] sm:$0xff] }
   0x6   :  { %69 = vst.msk [vmem:[#allocation2 + $0x20] sm:$0xf] %vm58_vm2, %v3510_v8  ;;  %74 = vst.msk [vmem:[#allocation2 + $0x2c] sm:$0xf] %vm58_vm2, %v3512_v10  ;;  %3852 = vmatprep.subr.mxu0 %v81_v2  ;;  %3867 = vmatprep.mubr.msk.f32.mxu1 %vm208_vm3, %v4466_v17  ;;  %v4475_v20 = vld [vmem:[%s5381_s0 + $0x8] sm:$0xf] }
   0x7   :  { %73 = vst.msk [vmem:[#allocation2 + $0x24] sm:$0xff] %vm56_vm1, %v3511_v9  ;;  %3853 = vmatpush3.msra.mxu0 %v81_v2  ;;  %v4480_v21 = vld [vmem:[%s5381_s0 + $0x10] sm:$0xff]  ;;  %v4492_v28 = vld [vmem:[%s5381_s0 + $0x18] sm:$0xf]  ;;  %v4497_v30 = vld [vmem:[%s5381_s0 + $0x20] sm:$0xff] }
   0x8   :  { %v4508_v33 = vld [vmem:[%s5381_s0 + $0x28] sm:$0xf]  ;;  %v4513_v34 = vld [vmem:[%s5381_s0 + $0x30] sm:$0xff]  ;;  %v4525_v36 = vld [vmem:[%s5381_s0 + $0x38] sm:$0xf] }
   0x9   :  { %v3536_v37 = vld [vmem:[%s5379_s2 + $0x38] sm:$0xff]  ;;  %v3535_v38 = vld [vmem:[%s5379_s2 + $0x30] sm:$0xff]  ;;  %v3534_v39 = vld [vmem:[%s5379_s2 + $0x28] sm:$0xff] }
   0xa   :  { %v75_v11 = vld [vmem:[#allocation2] sm:$0xff]  ;;  %3891 = vmatprep.subr.mxu0 %v3536_v37 }
   0xb   :  { %v76_v12 = vld [vmem:[#allocation2 + $0x8] sm:$0xff]  ;;  %3854 = vmatprep.mubr.msk.f32.mxu0 %vm56_vm1, %v75_v11  ;;  %v77_v13 = vld [vmem:[#allocation2 + $0x10] sm:$0xff]  ;;  %v3533_v40 = vld [vmem:[%s5379_s2 + $0x20] sm:$0xff] }
   0xc   :  { %3855 = vmatmul.mubr.msk.f32.vlgmr.msra.gmra.mxu0 %vm56_vm1, %v76_v12  ;;  %v78_v14 = vld [vmem:[#allocation2 + $0x18] sm:$0xff]  ;;  %v4546_v41 = vld [vmem:[%s5382_s3] ss:$0 sm:$0xff]  ;;  %s4341_s3 = smov 96  }
   0xd   :  { %3857 = vmatprep.mubr.msk.f32.mxu0 %vm56_vm1, %v77_v13  ;;  %3892 = vmatpush3.msra.mxu0 %v3536_v37 }
   0xe   :  { %v79_v15 = vld [vmem:[#allocation2 + $0x20] sm:$0xff]  ;;  %v80_v16 = vld [vmem:[#allocation2 + $0x28] sm:$0xff]  ;;  %3893 = vmatprep.subr.mxu0 %v3535_v38  ;;  %701 = vrot.lane.b32.xlu0 %v4546_v41, %s4341_s3 }
   0xf   :  { %3894 = vmatpush3.msra.mxu0 %v3535_v38 }
  0x10   :  { %3858 = vmatmul.mubr.msk.f32.gmra.mxu0 %vm56_vm1, %v78_v14  ;;  %3895 = vmatprep.subr.mxu0 %v3534_v39 }
  0x11   :  { %3860 = vmatprep.mubr.msk.f32.mxu0 %vm56_vm1, %v79_v15  ;;  %3896 = vmatpush3.msra.mxu0 %v3534_v39 }
  0x12   :  { %3897 = vmatprep.subr.mxu0 %v3533_v40  ;;  %1170 = vrot.lane.b32.xlu0 %v4546_v41, %s4342_s30 }
  0x13   :  { %3898 = vmatpush3.msra.mxu0 %v3533_v40 }
  0x14   :  { %3861 = vmatmul.mubr.msk.f32.gmra.mxu0 %vm56_vm1, %v80_v16 }
  0xcc   :  { %v3856_v18 = vpop.f32.mrf.mxu0 }
  0xcd   :  { %3863 = vmatprep.subr.msk.mxu1 %vm103_vm0, %v3856_v18  ;;  %v300_v24 = vrot.slane %v3856_v18, 4 }
  0xce   :  { %v173_v19 = vpop.f32.mrf.mxu0  ;;  %3864 = vmatpush3.msk.msra.mxu1 %vm103_vm0, %v3856_v18 }
  0xcf   :  { %3865 = vmatprep.subr.mxu1 %v173_v19 }
  0xd0   :  { %v3859_v22 = vpop.f32.mrf.mxu0  ;;  %3866 = vmatpush3.msra.mxu1 %v173_v19 }
  0xd1   :  { %3868 = vmatmul.mubr.msk.f32.vlgmr.msra.gmra.mxu1 %vm208_vm3, %v4475_v20 }
  0xd2   :  { %v183_v23 = vpop.f32.mrf.mxu0  ;;  %3874 = vmatprep.mubr.msk.f32.mxu1 %vm208_vm3, %v4480_v21 }
  0xd3   :  { %v301_v25 = vrot.slane %v183_v23, 4  ;;  %v3559_v23 = vld [vmem:[%s5379_s2 + $0x58] sm:$0xff] }
  0xd4   :  { %v3862_v26 = vpop.f32.mrf.mxu0 }
  0xd5   :  { %3870 = vmatprep.subr.msk.mxu1 %vm103_vm0, %v301_v25  ;;  %v302_v27 = vsel %vm103_vm0, %v300_v24, %v301_v25  ;;  %v481_v31 = vrot.slane %v3862_v26, 4  ;;  %v3558_v24 = vld [vmem:[%s5379_s2 + $0x50] sm:$0xff]  ;;  %v702_v26 = vpop.permute.xlu0 %701 }
  0xd6   :  { %3871 = vmatpush3.msk.msra.mxu1 %vm103_vm0, %v301_v25  ;;  %v193_v29 = vpop.f32.mrf.mxu0  ;;  %v3556_v25 = vld [vmem:[%s5379_s2 + $0x40] sm:$0xff] }
  0xd7   :  { %3872 = vmatprep.subr.mxu1 %v302_v27  ;;  %v480_v32 = vrot.slane %v193_v29, 4 }
  0xd8   :  { %3873 = vmatpush3.msra.mxu1 %v302_v27 }
  0xd9   :  { %3875 = vmatmul.mubr.msk.f32.vlgmr.msra.gmra.mxu1 %vm208_vm3, %v4492_v28  ;;  %3877 = vmatprep.subr.msk.mxu1 %vm103_vm0, %v193_v29  ;;  %v482_v35 = vsel %vm103_vm0, %v480_v32, %v481_v31 }
  0xda   :  { %3878 = vmatpush3.msk.msra.mxu1 %vm103_vm0, %v193_v29  ;;  %3881 = vmatprep.mubr.msk.f32.mxu1 %vm208_vm3, %v4497_v30 }
  0xdb   :  { %3879 = vmatprep.subr.mxu1 %v3859_v22 }
  0xdc   :  { %3880 = vmatpush3.msra.mxu1 %v3859_v22 }
  0xdd   :  { %3882 = vmatmul.mubr.msk.f32.vlgmr.msra.gmra.mxu1 %vm208_vm3, %v4508_v33  ;;  %3884 = vmatprep.subr.msk.mxu1 %vm103_vm0, %v481_v31 }
  0xde   :  { %3885 = vmatpush3.msk.msra.mxu1 %vm103_vm0, %v481_v31  ;;  %3888 = vmatprep.mubr.msk.f32.mxu1 %vm208_vm3, %v4513_v34 }
  0xdf   :  { %3886 = vmatprep.subr.mxu1 %v482_v35 }
  0xe0   :  { %3887 = vmatpush3.msra.mxu1 %v482_v35 }
  0xe1   :  { %3889 = vmatmul.mubr.msk.f32.vlgmr.msra.gmra.mxu1 %vm208_vm3, %v4525_v36 }
  0xe2   :  { %3912 = vmatprep.mubr.msk.f32.mxu1 %vm208_vm3, %v4466_v17 }
 0x191   :  { %v3869_v42 = vpop.f32.mrf.mxu1 }
 0x192   :  { %v290_v43 = vadd.f32 %v3869_v42, %v4546_v41 }
 0x193   :  { %v284_v44 = vpop.f32.mrf.mxu1 }
 0x194   :  { %4283 = vtanh.f32 %v290_v43  ;;  %v285_v45 = vadd.f32 %v4546_v41, %v284_v44 }
 0x196   :  { %4285 = vtanh.f32 %v285_v45 }
 0x199   :  { %v3876_v46 = vpop.f32.mrf.mxu1 }
 0x19a   :  { %v384_v47 = vadd.f32 %v3876_v46, %v4546_v41 }
 0x19b   :  { %v378_v48 = vpop.f32.mrf.mxu1 }
 0x19c   :  { %4287 = vtanh.f32 %v384_v47  ;;  %v379_v49 = vadd.f32 %v4546_v41, %v378_v48 }
 0x19d   :  { %v3883_v50 = vpop.f32.mrf.mxu1 }
 0x19e   :  { %4289 = vtanh.f32 %v379_v49  ;;  %v472_v51 = vadd.f32 %v3883_v50, %v4546_v41 }
 0x19f   :  { %v466_v52 = vpop.f32.mrf.mxu1 }
 0x1a0   :  { %4291 = vtanh.f32 %v472_v51  ;;  %v467_v53 = vadd.f32 %v4546_v41, %v466_v52 }
 0x1a1   :  { %v4554_v54 = vpop.eup %4283  ;;  %v3890_v55 = vpop.f32.mrf.mxu1 }
 0x1a2   :  { %4293 = vtanh.f32 %v467_v53  ;;  %v564_v56 = vadd.f32 %v3890_v55, %v4546_v41  ;;  %298 = vst.msk [vmem:[#allocation2 + $0x8] sm:$0xf] %vm297_vm4, %v4554_v54 }
 0x1a3   :  { %v4559_v57 = vpop.eup %4285  ;;  %v558_v58 = vpop.f32.mrf.mxu1 }
 0x1a4   :  { %4295 = vtanh.f32 %v564_v56  ;;  %v559_v59 = vadd.f32 %v4546_v41, %v558_v58  ;;  %296 = vst.msk [vmem:[#allocation2] sm:$0xff] %vm295_vm5, %v4559_v57 }
 0x1a6   :  { %4297 = vtanh.f32 %v559_v59 }
 0x1a9   :  { %v4564_v60 = vpop.eup %4287 }
 0x1aa   :  { %390 = vst.msk [vmem:[#allocation2 + $0x14] sm:$0xf] %vm297_vm4, %v4564_v60 }
 0x1ab   :  { %v4568_v61 = vpop.eup %4289  ;;  %v571_v62 = vld [vmem:[#allocation2] sm:$0xff] }
 0x1ac   :  { %3899 = vmatprep.mubr.msk.f32.mxu0 %vm295_vm5, %v571_v62  ;;  %389 = vst.msk [vmem:[#allocation2 + $0xc] sm:$0xff] %vm295_vm5, %v4568_v61 }
 0x1ad   :  { %v4573_v63 = vpop.eup %4291 }
 0x1ae   :  { %478 = vst.msk [vmem:[#allocation2 + $0x20] sm:$0xf] %vm297_vm4, %v4573_v63 }
 0x1af   :  { %v4577_v0 = vpop.eup %4293 }
 0x1b0   :  { %477 = vst.msk [vmem:[#allocation2 + $0x18] sm:$0xff] %vm295_vm5, %v4577_v0 }
 0x1b1   :  { %v4581_v1 = vpop.eup %4295 }
 0x1b2   :  { %570 = vst.msk [vmem:[#allocation2 + $0x2c] sm:$0xf] %vm297_vm4, %v4581_v1 }
 0x1b3   :  { %v4585_v2 = vpop.eup %4297  ;;  %v572_v3 = vld [vmem:[#allocation2 + $0x8] sm:$0xff]  ;;  %v573_v4 = vld [vmem:[#allocation2 + $0x10] sm:$0xff] }
 0x1b4   :  { %5403 = vst [vmem:[#allocation4_spill] sm:$0xff] %v4585_v2  ;;  %569 = vst.msk [vmem:[#allocation2 + $0x24] sm:$0xff] %vm295_vm5, %v4585_v2  ;;  %3900 = vmatmul.mubr.msk.f32.vlgmr.msra.gmra.mxu0 %vm295_vm5, %v572_v3 }
 0x1b5   :  { %3902 = vmatprep.mubr.msk.f32.mxu0 %vm295_vm5, %v573_v4 }
 0x1b7   :  { %v574_v5 = vld [vmem:[#allocation2 + $0x18] sm:$0xff] }
 0x1b8   :  { %3903 = vmatmul.mubr.msk.f32.gmra.mxu0 %vm295_vm5, %v574_v5 }
 0x1bb   :  { %v575_v6 = vld [vmem:[#allocation2 + $0x20] sm:$0xff]  ;;  %v576_v7 = vld [vmem:[#allocation2 + $0x28] sm:$0xff] }
 0x1bc   :  { %3905 = vmatprep.mubr.msk.f32.mxu0 %vm295_vm5, %v575_v6 }
 0x1bd   :  { %3906 = vmatmul.mubr.msk.f32.gmra.mxu0 %vm295_vm5, %v576_v7 }
 0x1be   :  { %3933 = vmatprep.mubr.msk.f32.mxu0 %vm208_vm3, %v4513_v34 }
 0x274   :  { %v3901_v8 = vpop.f32.mrf.mxu0 }
 0x275   :  { %3908 = vmatprep.subr.msk.mxu1 %vm103_vm0, %v3901_v8  ;;  %v787_v12 = vrot.slane %v3901_v8, 4 }
 0x276   :  { %v667_v9 = vpop.f32.mrf.mxu0  ;;  %3909 = vmatpush3.msk.msra.mxu1 %vm103_vm0, %v3901_v8 }
 0x277   :  { %3910 = vmatprep.subr.mxu1 %v667_v9 }
 0x278   :  { %v3904_v10 = vpop.f32.mrf.mxu0  ;;  %3911 = vmatpush3.msra.mxu1 %v667_v9 }
 0x279   :  { %3913 = vmatmul.mubr.msk.f32.vlgmr.msra.gmra.mxu1 %vm208_vm3, %v4475_v20 }
 0x27a   :  { %v677_v11 = vpop.f32.mrf.mxu0  ;;  %3919 = vmatprep.mubr.msk.f32.mxu1 %vm208_vm3, %v4480_v21 }
 0x27b   :  { %v788_v13 = vrot.slane %v677_v11, 4 }
 0x27d   :  { %v3907_v14 = vpop.f32.mrf.mxu0  ;;  %3915 = vmatprep.subr.msk.mxu1 %vm103_vm0, %v788_v13  ;;  %v789_v15 = vsel %vm103_vm0, %v787_v12, %v788_v13 }
 0x27e   :  { %v956_v16 = vrot.slane %v3907_v14, 4  ;;  %3916 = vmatpush3.msk.msra.mxu1 %vm103_vm0, %v788_v13 }
 0x27f   :  { %v687_v18 = vpop.f32.mrf.mxu0  ;;  %3917 = vmatprep.subr.mxu1 %v789_v15 }
 0x280   :  { %v955_v19 = vrot.slane %v687_v18, 4  ;;  %3918 = vmatpush3.msra.mxu1 %v789_v15  ;;  %3929 = vmatprep.subr.msk.mxu0 %vm103_vm0, %v956_v16 }
 0x281   :  { %3920 = vmatmul.mubr.msk.f32.vlgmr.msra.gmra.mxu1 %vm208_vm3, %v4492_v28  ;;  %3922 = vmatprep.subr.msk.mxu1 %vm103_vm0, %v687_v18 }
 0x282   :  { %3923 = vmatpush3.msk.msra.mxu1 %vm103_vm0, %v687_v18  ;;  %3930 = vmatpush3.msk.msra.mxu0 %vm103_vm0, %v956_v16  ;;  %v957_v22 = vsel %vm103_vm0, %v955_v19, %v956_v16  ;;  %v4693_v16 = vpop.permute.xlu0 %1170 }
 0x283   :  { %3924 = vmatprep.subr.mxu1 %v3904_v10  ;;  %3931 = vmatprep.subr.mxu0 %v957_v22 }
 0x284   :  { %3925 = vmatpush3.msra.mxu1 %v3904_v10  ;;  %3926 = vmatprep.mubr.msk.f32.mxu1 %vm208_vm3, %v4497_v30 }
 0x285   :  { %3932 = vmatpush3.msra.mxu0 %v957_v22  ;;  %3927 = vmatmul.mubr.msk.f32.vlgmr.msra.gmra.mxu1 %vm208_vm3, %v4508_v33 }
 0x286   :  { %3934 = vmatmul.mubr.msk.f32.vlgmr.msra.gmra.mxu0 %vm208_vm3, %v4525_v36  ;;  %3936 = vmatprep.subr.mxu1 %v3559_v23 }
 0x287   :  { %3957 = vmatprep.mubr.msk.f32.mxu0 %vm208_vm3, %v4466_v17  ;;  %3937 = vmatpush3.msra.mxu1 %v3559_v23  ;;  %v3557_v17 = vld [vmem:[%s5379_s2 + $0x48] sm:$0xff]  ;;  %s4343_s2 = smov 32   ;;  %v4707_v23 = vld [vmem:[%s5383_s4 + $0x38] sm:$0xff] }
 0x288   :  { %3938 = vmatprep.subr.mxu1 %v3558_v24 }
 0x289   :  { %3939 = vmatpush3.msra.mxu1 %v3558_v24  ;;  %v4716_v24 = vld [vmem:[%s5383_s4 + $0x30] sm:$0xff] }
 0x28a   :  { %3940 = vmatprep.subr.mxu1 %v3557_v17 }
 0x28b   :  { %3941 = vmatpush3.msra.mxu1 %v3557_v17  ;;  %v4723_v17 = vld [vmem:[%s5383_s4 + $0x28] sm:$0xff] }
 0x28c   :  { %3942 = vmatprep.subr.mxu1 %v3556_v25 }
 0x28d   :  { %3943 = vmatpush3.msra.mxu1 %v3556_v25  ;;  %v4730_v25 = vld [vmem:[%s5383_s4 + $0x20] sm:$0xff] }
 0x339   :  { %v3914_v27 = vpop.f32.mrf.mxu1 }
 0x33a   :  { %v779_v29 = vadd.f32 %v3914_v27, %v702_v26  ;;  %v4744_v27 = vld [vmem:[%s5383_s4 + $0x10] sm:$0xff] }
 0x33b   :  { %v773_v31 = vpop.f32.mrf.mxu1 }
 0x33c   :  { %4299 = vtanh.f32 %v779_v29  ;;  %v774_v32 = vadd.f32 %v773_v31, %v702_v26  ;;  %v1532_v29 = vlaneseq }
 0x33e   :  { %4301 = vtanh.f32 %v774_v32  ;;  %v4750_v31 = vshrl.u32 %v1532_v29, 7  ;;  %v4752_v32 = vand.u32 127, %v1532_v29  ;;  %v4816_v29 = vld [vmem:[%s5383_s4] sm:$0xff] }
 0x340   :  { %vm1537_vm7 = vcmp.eq.s32.totalorder %v4750_v31, %v4752_v32  ;;  %vm1541_vm11 = vcmp.lt.s32.totalorder %v4750_v31, %v4752_v32 }
 0x341   :  { %v3921_v35 = vpop.f32.mrf.mxu1 }
 0x342   :  { %v865_v37 = vadd.f32 %v3921_v35, %v702_v26  ;;  %v4755_v35 = vadd.s32 8, %v4750_v31 }
 0x343   :  { %v859_v38 = vpop.f32.mrf.mxu1 }
 0x344   :  { %4303 = vtanh.f32 %v865_v37  ;;  %v860_v39 = vadd.f32 %v859_v38, %v702_v26  ;;  %vm1538_vm8 = vcmp.eq.s32.totalorder %v4755_v35, %v4752_v32  ;;  %v5398_v37 = vmov 0.0  }
 0x345   :  { %v3928_v40 = vpop.f32.mrf.mxu1  ;;  %v4762_v38 = vsel %vm1537_vm7, 1.0, %v5398_v37  ;;  %vm1542_vm12 = vcmp.lt.s32.totalorder %v4755_v35, %v4752_v32 }
 0x346   :  { %4305 = vtanh.f32 %v860_v39  ;;  %v947_v41 = vadd.f32 %v3928_v40, %v702_v26  ;;  %v3935_v42 = vpop.f32.mrf.mxu0  ;;  %v4765_v40 = vsel %vm1538_vm8, 1.0, %v5398_v37 }
 0x347   :  { %v1033_v43 = vadd.f32 %v3935_v42, %v702_v26  ;;  %v941_v44 = vpop.f32.mrf.mxu1 }
 0x348   :  { %4307 = vtanh.f32 %v947_v41  ;;  %v942_v45 = vadd.f32 %v941_v44, %v702_v26  ;;  %v1027_v46 = vpop.f32.mrf.mxu0 }
 0x349   :  { %v4300_v47 = vpop.eup %4299  ;;  %4309 = vtanh.f32 %v1033_v43  ;;  %v1028_v48 = vadd.f32 %v1027_v46, %v702_v26  ;;  %v4737_v26 = vld [vmem:[%s5383_s4 + $0x18] sm:$0xff] }
 0x34a   :  { %785 = vst.msk [vmem:[#allocation2 + $0x8] sm:$0xf] %vm297_vm4, %v4300_v47  ;;  %4311 = vtanh.f32 %v942_v45  ;;  %1549 = vrot.lane.b32.xlu0 %v4300_v47, %s4343_s2 }
 0x34b   :  { %v4302_v49 = vpop.eup %4301  ;;  %4313 = vtanh.f32 %v1028_v48 }
 0x34c   :  { %784 = vst.msk [vmem:[#allocation2] sm:$0xff] %vm295_vm5, %v4302_v49 }
 0x34e   :  { %1547 = vrot.lane.b32.xlu0 %v4302_v49, %s4343_s2 }
 0x351   :  { %v4639_v50 = vpop.eup %4303 }
 0x352   :  { %871 = vst.msk [vmem:[#allocation2 + $0x14] sm:$0xf] %vm297_vm4, %v4639_v50 }
 0x353   :  { %v4643_v51 = vpop.eup %4305  ;;  %v1040_v52 = vld [vmem:[#allocation2] sm:$0xff] }
 0x354   :  { %870 = vst.msk [vmem:[#allocation2 + $0xc] sm:$0xff] %vm295_vm5, %v4643_v51  ;;  %3944 = vmatprep.mubr.msk.f32.mxu1 %vm295_vm5, %v1040_v52 }
 0x355   :  { %v4648_v53 = vpop.eup %4307 }
 0x356   :  { %v4650_v55 = vpop.eup %4309  ;;  %953 = vst.msk [vmem:[#allocation2 + $0x20] sm:$0xf] %vm297_vm4, %v4648_v53 }
 0x357   :  { %v4654_v56 = vpop.eup %4311  ;;  %1039 = vst.msk [vmem:[#allocation2 + $0x2c] sm:$0xf] %vm297_vm4, %v4650_v55 }
 0x358   :  { %v4658_v58 = vpop.eup %4313  ;;  %952 = vst.msk [vmem:[#allocation2 + $0x18] sm:$0xff] %vm295_vm5, %v4654_v56 }
 0x359   :  { %1038 = vst.msk [vmem:[#allocation2 + $0x24] sm:$0xff] %vm295_vm5, %v4658_v58 }
 0x35b   :  { %v1041_v59 = vld [vmem:[#allocation2 + $0x8] sm:$0xff]  ;;  %v1042_v62 = vld [vmem:[#allocation2 + $0x10] sm:$0xff] }
 0x35c   :  { %3945 = vmatmul.mubr.msk.f32.vlgmr.msra.gmra.mxu1 %vm295_vm5, %v1041_v59 }
 0x35d   :  { %3947 = vmatprep.mubr.msk.f32.mxu1 %vm295_vm5, %v1042_v62 }
 0x35f   :  { %v1043_v3 = vld [vmem:[#allocation2 + $0x18] sm:$0xff] }
 0x360   :  { %3948 = vmatmul.mubr.msk.f32.gmra.mxu1 %vm295_vm5, %v1043_v3  ;;  %v1044_v4 = vld [vmem:[#allocation2 + $0x20] sm:$0xff]  ;;  %v1045_v5 = vld [vmem:[#allocation2 + $0x28] sm:$0xff] }
 0x361   :  { %3950 = vmatprep.mubr.msk.f32.mxu1 %vm295_vm5, %v1044_v4 }
 0x364   :  { %3951 = vmatmul.mubr.msk.f32.gmra.mxu1 %vm295_vm5, %v1045_v5 }
 0x3bc   :  { %v1550_v41 = vpop.permute.xlu0 %1549 }
 0x3bd   :  { %v1562_v47 = vsel %vm295_vm5, %v4554_v54, %v1550_v41 }
 0x3c0   :  { %v1548_v52 = vpop.permute.xlu0 %1547 }
 0x3c1   :  { %v1561_v3 = vsel %vm295_vm5, %v4559_v57, %v1548_v52 }
 0x41c   :  { %v3946_v6 = vpop.f32.mrf.mxu1 }
 0x41d   :  { %3953 = vmatprep.subr.msk.mxu0 %vm103_vm0, %v3946_v6  ;;  %v1254_v10 = vrot.slane %v3946_v6, 4 }
 0x41e   :  { %v1136_v7 = vpop.f32.mrf.mxu1  ;;  %3954 = vmatpush3.msk.msra.mxu0 %vm103_vm0, %v3946_v6 }
 0x41f   :  { %3955 = vmatprep.subr.mxu0 %v1136_v7 }
 0x420   :  { %v3949_v8 = vpop.f32.mrf.mxu1  ;;  %3956 = vmatpush3.msra.mxu0 %v1136_v7 }
 0x421   :  { %3958 = vmatmul.mubr.msk.f32.vlgmr.msra.gmra.mxu0 %vm208_vm3, %v4475_v20 }
 0x422   :  { %v1146_v9 = vpop.f32.mrf.mxu1  ;;  %3964 = vmatprep.mubr.msk.f32.mxu0 %vm208_vm3, %v4480_v21 }
 0x423   :  { %v1255_v11 = vrot.slane %v1146_v9, 4 }
 0x424   :  { %v3952_v12 = vpop.f32.mrf.mxu1 }
 0x425   :  { %3960 = vmatprep.subr.msk.mxu0 %vm103_vm0, %v1255_v11  ;;  %v1256_v13 = vsel %vm103_vm0, %v1254_v10, %v1255_v11  ;;  %v1419_v21 = vrot.slane %v3952_v12, 4 }
 0x426   :  { %3961 = vmatpush3.msk.msra.mxu0 %vm103_vm0, %v1255_v11  ;;  %v1156_v14 = vpop.f32.mrf.mxu1 }
 0x427   :  { %3962 = vmatprep.subr.mxu0 %v1256_v13  ;;  %v1418_v20 = vrot.slane %v1156_v14, 4 }
 0x428   :  { %3963 = vmatpush3.msra.mxu0 %v1256_v13 }
 0x429   :  { %3965 = vmatmul.mubr.msk.f32.vlgmr.msra.gmra.mxu0 %vm208_vm3, %v4492_v28  ;;  %3967 = vmatprep.subr.msk.mxu0 %vm103_vm0, %v1156_v14  ;;  %v1420_v28 = vsel %vm103_vm0, %v1418_v20, %v1419_v21 }
 0x42a   :  { %3968 = vmatpush3.msk.msra.mxu0 %vm103_vm0, %v1156_v14  ;;  %3971 = vmatprep.mubr.msk.f32.mxu0 %vm208_vm3, %v4497_v30  ;;  %v4344_v30 = vmov 0  }
 0x42b   :  { %3969 = vmatprep.subr.mxu0 %v3949_v8  ;;  %4281 = vset.pattern.permute.xlu1 %v4344_v30 }
 0x42c   :  { %3970 = vmatpush3.msra.mxu0 %v3949_v8  ;;  %4282 = vset.pattern.permute.xlu0 %v4344_v30  ;;  %v4795_v30 = vcvt.s32.f32 %v4750_v31 }
 0x42d   :  { %3972 = vmatmul.mubr.msk.f32.vlgmr.msra.gmra.mxu0 %vm208_vm3, %v4508_v33  ;;  %3974 = vmatprep.subr.msk.mxu0 %vm103_vm0, %v1419_v21 }
 0x42e   :  { %3975 = vmatpush3.msk.msra.mxu0 %vm103_vm0, %v1419_v21  ;;  %3978 = vmatprep.mubr.msk.f32.mxu0 %vm208_vm3, %v4513_v34 }
 0x42f   :  { %3976 = vmatprep.subr.mxu0 %v1420_v28 }
 0x430   :  { %3977 = vmatpush3.msra.mxu0 %v1420_v28 }
 0x431   :  { %3979 = vmatmul.mubr.msk.f32.vlgmr.msra.gmra.mxu0 %vm208_vm3, %v4525_v36  ;;  %v4702_v36 = vld [vmem:[%s5383_s4 + $0x40] sm:$0x1] }
 0x432   :  { %3988 = vmatprep.subr.msk.mxu0 %vm5402_vm6, %v4702_v36 }
 0x433   :  { %3989 = vmatpush3.msk.msra.mxu0 %vm5402_vm6, %v4702_v36 }
 0x434   :  { %3990 = vmatprep.subr.mxu0 %v4707_v23 }
 0x435   :  { %3991 = vmatpush3.msra.mxu0 %v4707_v23 }
 0x436   :  { %3992 = vmatprep.subr.mxu0 %v4716_v24 }
 0x437   :  { %3993 = vmatpush3.msra.mxu0 %v4716_v24 }
 0x438   :  { %3994 = vmatprep.subr.mxu0 %v4723_v17 }
 0x439   :  { %3995 = vmatpush3.msra.mxu0 %v4723_v17 }
 0x43a   :  { %3996 = vmatprep.subr.mxu0 %v4730_v25 }
 0x43b   :  { %3997 = vmatpush3.msra.mxu0 %v4730_v25 }
 0x43c   :  { %3998 = vmatprep.subr.mxu0 %v4737_v26 }
 0x43d   :  { %3999 = vmatpush3.msra.mxu0 %v4737_v26 }
 0x43e   :  { %4000 = vmatprep.subr.mxu0 %v4744_v27 }
 0x43f   :  { %4001 = vmatpush3.msra.mxu0 %v4744_v27 }
 0x4e1   :  { %v3959_v15 = vpop.f32.mrf.mxu0 }
 0x4e2   :  { %v1248_v19 = vadd.f32 %v3959_v15, %v4693_v16  ;;  %v4798_v15 = vcvt.s32.f32 %v4755_v35 }
 0x4e3   :  { %v1242_v33 = vpop.f32.mrf.mxu0 }
 0x4e4   :  { %v1243_v18 = vadd.f32 %v1242_v33, %v4693_v16 }
 0x4e6   :  { %4315 = vtanh.f32 %v1243_v18 }
 0x4e7   :  { %4317 = vtanh.f32 %v1248_v19 }
 0x4f3   :  { %v4316_v22 = vpop.eup %4315 }
 0x4f4   :  { %1567 = vperm.xlu1 %4281, %v4316_v22   ;;  %v4318_v34 = vpop.eup %4317 }
 0x4f8   :  { %1571 = vperm.xlu1 %4281, %v4318_v34  }
 0x4fc   :  { %1557 = vrot.lane.b32.xlu1 %v4318_v34, %s4342_s30  ;;  %v4809_v34 = vld [vmem:[%s5383_s4 + $0x8] sm:$0xff] }
 0x4fd   :  { %4002 = vmatprep.subr.mxu0 %v4809_v34 }
 0x4fe   :  { %4003 = vmatpush3.msra.mxu0 %v4809_v34 }
 0x4ff   :  { %4004 = vmatprep.subr.mxu0 %v4816_v29 }
 0x500   :  { %1555 = vrot.lane.b32.xlu1 %v4316_v22, %s4342_s30  ;;  %4005 = vmatpush3.msra.mxu0 %v4816_v29 }
 0x501   :  { %4032 = vmatprep.subr.mxu0 %v5398_v37 }
 0x56f   :  { %v1568_v39 = vpop.permute.xlu1 %1567 }
 0x570   :  { %v1574_v42 = vmul.f32 %v1568_v39, %v4762_v38 }
 0x572   :  { %v1576_v45 = vsel %vm208_vm3, %v1574_v42, 0.0  ;;  %v4826_v42 = vld [vmem:[%s5384_s6 + $0x48] sm:$0xff] }
 0x573   :  { %v1572_v43 = vpop.permute.xlu1 %1571 }
 0x574   :  { %v1575_v44 = vmul.f32 %v1572_v43, %v4765_v40 }
 0x576   :  { %v1578_v46 = vsel %vm1577_vm9, %v1575_v44, 0.0  ;;  %v4838_v44 = vld [vmem:[%s5384_s6 + $0x38] sm:$0xff] }
 0x577   :  { %v1579_v48 = vadd.f32 %v1578_v46, %v1576_v45  ;;  %v1558_v49 = vpop.permute.xlu1 %1557  ;;  %v4845_v45 = vld [vmem:[%s5384_s6 + $0x30] sm:$0xff]  ;;  %v4852_v46 = vld [vmem:[%s5384_s6 + $0x28] sm:$0xff] }
 0x578   :  { %v1565_v59 = vsel %vm1563_vm10, %v1562_v47, %v1558_v49  ;;  %v4859_v47 = vld [vmem:[%s5384_s6 + $0x20] sm:$0xff]  ;;  %v3966_v49 = vpop.f32.mrf.mxu0 }
 0x579   :  { %v1580_v62 = vrot.slane %v1579_v48, 4  ;;  %3981 = vmatprep.subr.msk.mxu1 %vm103_vm0, %v1565_v59 }
 0x57a   :  { %3982 = vmatpush3.msk.msra.mxu1 %vm103_vm0, %v1565_v59  ;;  %v1326_v52 = vpop.f32.mrf.mxu0 }
 0x57b   :  { %v1581_v4 = vadd.f32 %v1580_v62, %v1579_v48  ;;  %v1556_v5 = vpop.permute.xlu1 %1555  ;;  %v4866_v48 = vld [vmem:[%s5384_s6 + $0x18] sm:$0xff] }
 0x57c   :  { %v1564_v6 = vsel %vm1563_vm10, %v1561_v3, %v1556_v5  ;;  %v4872_v59 = vpop.f32.mrf.mxu0 }
 0x57d   :  { %v1582_v7 = vrot.slane %v1581_v4, 2  ;;  %3983 = vmatprep.subr.mxu1 %v1564_v6 }
 0x57e   :  { %3984 = vmatpush3.msra.mxu1 %v1564_v6  ;;  %v4874_v62 = vpop.f32.mrf.mxu0  ;;  %v4883_v6 = vld [vmem:[%s5385_s5] ss:$0 sm:$0xff] }
 0x57f   :  { %v1583_v54 = vadd.f32 %v1582_v7, %v1581_v4  ;;  %4009 = vmatprep.subr.mxu1 %v5398_v37  ;;  %v4888_v7 = vld [vmem:[%s5384_s6 + $0x10] sm:$0xff] }
 0x580   :  { %v4876_v3 = vpop.f32.mrf.mxu0 }
 0x581   :  { %v1584_v8 = vrot.slane %v1583_v54, 1 }
 0x582   :  { %v4878_v4 = vpop.f32.mrf.mxu0 }
 0x583   :  { %v1585_v9 = vadd.f32 %v1584_v8, %v1583_v54  ;;  %v4893_v54 = vld [vmem:[%s5384_s6 + $0x8] sm:$0xff]  ;;  %v1332_v8 = vadd.f32 %v3966_v49, %v4693_v16  ;;  %v4928_v49 = vld [vmem:[%s5386_s8 + $0x10] sm:$0xff] }
 0x585   :  { %vm1586_vm13 = vcmp.gt.f32.partialorder %v1568_v39, %v1585_v9  ;;  %vm1588_vm14 = vcmp.eq.f32.partialorder %v1568_v39, %v1585_v9  ;;  %vm1589_vm15 = vcmp.eq.f32.partialorder %v1572_v43, %v1585_v9  ;;  %vm1587_vm1 = vcmp.gt.f32.partialorder %v1572_v43, %v1585_v9  ;;  %v4831_v43 = vld [vmem:[%s5384_s6 + $0x40] sm:$0xff] }
 0x586   :  { %vm1590_vm2 = vmand %vm1588_vm14, %vm1541_vm11  ;;  %4319 = vtanh.f32 %v1332_v8  ;;  %v4941_v8 = vld [vmem:[%s5386_s8] sm:$0xff] }
 0x587   :  { %vm1591_vm4 = vmand %vm1589_vm15, %vm1542_vm12  ;;  %vm5395_vm15 = vcmask 531456  }
 0x588   :  { %vm1592_vm7 = vmor %vm1586_vm13, %vm1590_vm2  ;;  %vm5394_vm2 = vcmask 130048  }
 0x589   :  { %vm1593_vm8 = vmor %vm1587_vm1, %vm1591_vm4  ;;  %v3579_v57 = vsel %vm1592_vm7, 1.0, %v5398_v37  ;;  %vm5396_vm1 = vmmov 0   ;;  %vm5393_vm4 = vcmask 392192   ;;  %vm5392_vm7 = vcmask 654336  }
 0x58a   :  { %v3580_v10 = vsel %vm1593_vm8, 1.0, %v5398_v37  ;;  %v1598_v11 = vsel %vm208_vm3, %v3579_v57, 0.0  ;;  %v1327_v57 = vadd.f32 %v1326_v52, %v4693_v16 }
 0x58b   :  { %v1599_v12 = vsel %vm1577_vm9, %v3580_v10, 0.0 }
 0x58c   :  { %v1600_v13 = vadd.f32 %v1599_v12, %v1598_v11  ;;  %v4906_v12 = vld [vmem:[%s5384_s6] sm:$0xff]  ;;  %4321 = vtanh.f32 %v1327_v57  ;;  %s4347_s6 = smov 16  }
 0x58e   :  { %v1601_v14 = vrot.slane %v1600_v13, 4 }
 0x590   :  { %v1602_v20 = vadd.f32 %v1601_v14, %v1600_v13 }
 0x592   :  { %v1603_v21 = vrot.slane %v1602_v20, 2 }
 0x594   :  { %v1604_v28 = vadd.f32 %v1603_v21, %v1602_v20  ;;  %v4917_v21 = vld [vmem:[%s5386_s8 + $0x18] sm:$0xff] }
 0x596   :  { %v1605_v33 = vrot.slane %v1604_v28, 1 }
 0x598   :  { %v1606_v18 = vadd.f32 %v1605_v33, %v1604_v28 }
 0x59a   :  { %vm1607_vm13 = vcmp.eq.f32.partialorder %v1606_v18, %v4795_v30  ;;  %vm1608_vm14 = vcmp.eq.f32.partialorder %v1606_v18, %v4798_v15 }
 0x59b   :  { %v1609_v19 = vsel %vm1607_vm13, 1.0, %v5398_v37  ;;  %v1610_v22 = vsel %vm1608_vm14, 1.0, %v5398_v37 }
 0x59c   :  { %3985 = vmatprep.mubr.msk.f32.mxu1 %vm208_vm3, %v1609_v19 }
 0x59d   :  { %3986 = vmatmul.mubr.msk.f32.vlgmr.msra.gmra.mxu1 %vm208_vm3, %v1610_v22 }
 0x59e   :  { %4010 = vmatpush3.msra.mxu1 %v4826_v42  ;;  %4029 = vmatprep.mubr.msk.f32.mxu1 %vm5396_vm1, %v5398_v37 }
 0x59f   :  { %4011 = vmatprep.subr.mxu1 %v5398_v37 }
 0x5a0   :  { %4012 = vmatpush3.msra.mxu1 %v4831_v43 }
 0x5a1   :  { %4013 = vmatprep.subr.mxu1 %v5398_v37 }
 0x5a2   :  { %4014 = vmatpush3.msra.mxu1 %v4838_v44 }
 0x5a3   :  { %4015 = vmatprep.subr.mxu1 %v5398_v37 }
 0x5a4   :  { %4016 = vmatpush3.msra.mxu1 %v4845_v45 }
 0x5a5   :  { %4017 = vmatprep.subr.mxu1 %v5398_v37 }
 0x5a6   :  { %4018 = vmatpush3.msra.mxu1 %v4852_v46 }
 0x5a7   :  { %4019 = vmatprep.subr.mxu1 %v5398_v37 }
 0x5a8   :  { %4020 = vmatpush3.msra.mxu1 %v4859_v47 }
 0x5a9   :  { %4021 = vmatprep.subr.mxu1 %v5398_v37 }
 0x5aa   :  { %4022 = vmatpush3.msra.mxu1 %v4866_v48 }
 0x5ab   :  { %4023 = vmatprep.subr.mxu1 %v5398_v37 }
 0x5ac   :  { %4024 = vmatpush3.msra.mxu1 %v4888_v7 }
 0x5ad   :  { %4025 = vmatprep.subr.mxu1 %v5398_v37 }
 0x5ae   :  { %4026 = vmatpush3.msra.mxu1 %v4893_v54 }
 0x5af   :  { %4027 = vmatprep.subr.mxu1 %v5398_v37 }
 0x5b0   :  { %4028 = vmatpush3.msra.mxu1 %v4906_v12 }
 0x5b1   :  { %4043 = vmatprep.subr.mxu1 %v5398_v37 }
 0x65d   :  { %v3987_v39 = vpop.f32.mrf.mxu1 }
 0x65f   :  { %v1686_v41 = vpop.f32.mrf.mxu1 }
 0x660   :  { %4006 = vmatprep.mubr.msk.f32.mxu0 %vm5395_vm15, %v1686_v41  ;;  %v4320_v41 = vpop.eup %4319 }
 0x661   :  { %4007 = vmatmul.mubr.msk.f32.vlgmr.msra.gmra.mxu0 %vm5395_vm15, %v3987_v39  ;;  %v4322_v52 = vpop.eup %4321 }
 0x662   :  { %4040 = vmatprep.mubr.msk.f32.mxu0 %vm5396_vm1, %v5398_v37  ;;  %4033 = vmatpush3.msra.mxu0 %v4917_v21 }
 0x663   :  { %4034 = vmatprep.subr.mxu0 %v5398_v37 }
 0x664   :  { %4035 = vmatpush3.msra.mxu0 %v4928_v49 }
 0x665   :  { %4036 = vmatprep.subr.mxu0 %v5398_v37 }
 0x721   :  { %v4008_v5 = vpop.f32.mrf.mxu0 }
 0x722   :  { %v1784_v10 = vadd.f32 %v4008_v5, %v4883_v6  ;;  %v4934_v5 = vld [vmem:[%s5386_s8 + $0x8] sm:$0xff] }
 0x723   :  { %v1778_v9 = vpop.f32.mrf.mxu0  ;;  %4037 = vmatpush3.msra.mxu0 %v4934_v5 }
 0x724   :  { %v1779_v11 = vadd.f32 %v4883_v6, %v1778_v9  ;;  %v1788_v14 = vmax.f32 %v1784_v10, 0.0  ;;  %4038 = vmatprep.subr.mxu0 %v5398_v37 }
 0x725   :  { %4039 = vmatpush3.msra.mxu0 %v4941_v8 }
 0x726   :  { %v1787_v13 = vmax.f32 %v1779_v11, 0.0  ;;  %v1794_v33 = vrot.slane %v1788_v14, 1 }
 0x728   :  { %v1790_v20 = vrot.slane %v1787_v13, 1  ;;  %v1796_v22 = vmax.f32 %v1788_v14, %v1794_v33 }
 0x72a   :  { %v1792_v28 = vmax.f32 %v1787_v13, %v1790_v20 }
 0x72c   :  { %v1802_v18 = vrot.slane %v1792_v28, 4  ;;  %v1798_v19 = vrot.slane %v1792_v28, 2  ;;  %v1806_v39 = vrot.slane %v1792_v28, 6 }
 0x72e   :  { %1803 = vrot.lane.b32.xlu1 %v1802_v18, %s4343_s2  ;;  %1799 = vrot.lane.b32.xlu0 %v1798_v19, %s4347_s6 }
 0x732   :  { %1811 = vrot.lane.b32.xlu1 %v1796_v22, %s4342_s30  ;;  %1807 = vrot.lane.b32.xlu0 %v1806_v39, %s4348_s23 }
 0x736   :  { %2070 = vperm.xlu1 %4281, %v4320_v41   ;;  %2066 = vperm.xlu0 %4282, %v4322_v52  }
 0x73a   :  { %2049 = vrot.lane.b32.xlu1 %v4639_v50, %s4343_s2  ;;  %2057 = vrot.lane.b32.xlu0 %v4320_v41, %s4342_s30 }
 0x73e   :  { %2047 = vrot.lane.b32.xlu1 %v4643_v51, %s4343_s2  ;;  %2055 = vrot.lane.b32.xlu0 %v4322_v52, %s4342_s30 }
 0x7a0   :  { %v1804_v9 = vpop.permute.xlu1 %1803  ;;  %v1800_v57 = vpop.permute.xlu0 %1799 }
 0x7a1   :  { %v1815_v10 = vsel %vm5394_vm2, %v1792_v28, %v1800_v57 }
 0x7a2   :  { %v1816_v13 = vsel %vm295_vm5, %v1815_v10, %v1804_v9 }
 0x7a4   :  { %v1812_v11 = vpop.permute.xlu1 %1811  ;;  %v1808_v14 = vpop.permute.xlu0 %1807 }
 0x7a5   :  { %v1818_v50 = vsel %vm5393_vm4, %v1816_v13, %v1808_v14 }
 0x7a6   :  { %v1819_v20 = vsel %vm1563_vm10, %v1818_v50, %v1812_v11 }
 0x7a7   :  { %4030 = vmatmul.mubr.msk.f32.vlgmr.msra.gmra.mxu1 %vm5392_vm7, %v1819_v20 }
 0x7a8   :  { %4051 = vmatprep.mubr.msk.f32.mxu1 %vm5396_vm1, %v5398_v37 }
 0x7b1   :  { %v2071_v51 = vpop.permute.xlu1 %2070  ;;  %v2067_v33 = vpop.permute.xlu0 %2066 }
 0x7b2   :  { %v2074_v18 = vmul.f32 %v2071_v51, %v4765_v40  ;;  %v2073_v28 = vmul.f32 %v2067_v33, %v4762_v38 }
 0x7b4   :  { %v2076_v19 = vsel %vm1577_vm9, %v2074_v18, 0.0  ;;  %v2075_v22 = vsel %vm208_vm3, %v2073_v28, 0.0 }
 0x7b5   :  { %v2077_v39 = vadd.f32 %v2076_v19, %v2075_v22  ;;  %v2050_v41 = vpop.permute.xlu1 %2049  ;;  %v2058_v52 = vpop.permute.xlu0 %2057 }
 0x7b6   :  { %v2062_v9 = vsel %vm295_vm5, %v4564_v60, %v2050_v41 }
 0x7b7   :  { %v2078_v57 = vrot.slane %v2077_v39, 4  ;;  %v2064_v10 = vsel %vm1563_vm10, %v2062_v9, %v2058_v52 }
 0x7b8   :  { %4054 = vmatprep.subr.msk.mxu0 %vm103_vm0, %v2064_v10 }
 0x7b9   :  { %v2079_v11 = vadd.f32 %v2078_v57, %v2077_v39  ;;  %v4986_v57 = vld [vmem:[%s5388_s7] sm:$0x1] }
 0x7bb   :  { %v2080_v13 = vrot.slane %v2079_v11, 2 }
 0x7bd   :  { %v2081_v14 = vadd.f32 %v2080_v13, %v2079_v11  ;;  %v2048_v13 = vpop.permute.xlu1 %2047 }
 0x7bf   :  { %v2082_v50 = vrot.slane %v2081_v14, 1 }
 0x7c1   :  { %v2083_v20 = vadd.f32 %v2082_v50, %v2081_v14 }
 0x7c3   :  { %vm2084_vm8 = vcmp.gt.f32.partialorder %v2067_v33, %v2083_v20  ;;  %vm2085_vm13 = vcmp.gt.f32.partialorder %v2071_v51, %v2083_v20  ;;  %vm2086_vm14 = vcmp.eq.f32.partialorder %v2067_v33, %v2083_v20  ;;  %vm2087_vm7 = vcmp.eq.f32.partialorder %v2071_v51, %v2083_v20  ;;  %v4979_v51 = vld [vmem:[%s5387_s10 + $0x18] sm:$0xff] }
 0x7c4   :  { %vm2088_vm4 = vmand %vm2086_vm14, %vm1541_vm11  ;;  %4044 = vmatpush3.msra.mxu1 %v4979_v51  ;;  %vm5408_vm14 = vcmask 392192  }
 0x7c5   :  { %vm2089_vm2 = vmand %vm2087_vm7, %vm1542_vm12  ;;  %4045 = vmatprep.subr.mxu1 %v5398_v37 }
 0x7c6   :  { %vm2090_vm15 = vmor %vm2084_vm8, %vm2088_vm4  ;;  %vm5405_vm4 = vcmask 531456   ;;  %vm5401_vm8 = vcmask 0  }
 0x7c7   :  { %vm2091_vm1 = vmor %vm2085_vm13, %vm2089_vm2  ;;  %v3591_v60 = vsel %vm2090_vm15, 1.0, %v5398_v37  ;;  %vm5404_vm2 = vmmov 0   ;;  %vm5407_vm13 = vcmask 130048  }
 0x7c8   :  { %v3592_v18 = vsel %vm2091_vm1, 1.0, %v5398_v37  ;;  %v2096_v28 = vsel %vm208_vm3, %v3591_v60, 0.0  ;;  %v2061_v60 = vsel %vm295_vm5, %v4568_v61, %v2048_v13  ;;  %v5024_v61 = vld [vmem:[%s5387_s10 + $0x10] sm:$0xff]  ;;  %vm5406_vm7 = vmmov %vm5405_vm4 }
 0x7c9   :  { %v2097_v19 = vsel %vm1577_vm9, %v3592_v18, 0.0  ;;  %v2056_v18 = vpop.permute.xlu0 %2055  ;;  %4046 = vmatpush3.msra.mxu1 %v5024_v61 }
 0x7ca   :  { %v2098_v33 = vadd.f32 %v2097_v19, %v2096_v28  ;;  %4047 = vmatprep.subr.mxu1 %v5398_v37 }
 0x7cc   :  { %v2099_v22 = vrot.slane %v2098_v33, 4 }
 0x7ce   :  { %v2100_v39 = vadd.f32 %v2099_v22, %v2098_v33  ;;  %v2063_v33 = vsel %vm1563_vm10, %v2061_v60, %v2056_v18 }
 0x7d0   :  { %v2101_v41 = vrot.slane %v2100_v39, 2 }
 0x7d2   :  { %v2102_v52 = vadd.f32 %v2101_v41, %v2100_v39  ;;  %v5036_v39 = vld [vmem:[%s5387_s10] sm:$0xff]  ;;  %v17_v41 = vstv %s5389_s11 }
 0x7d3   :  { %18 = vst [vmem:[#allocation3] sm:$0x1] %v17_v41 }
 0x7d4   :  { %v2103_v9 = vrot.slane %v2102_v52, 1 }
 0x7d6   :  { %v2104_v11 = vadd.f32 %v2103_v9, %v2102_v52  ;;  %v5048_v52 = vld [vmem:[%s5390_s9] sm:$0x1] }
 0x7d8   :  { %vm2105_vm15 = vcmp.eq.f32.partialorder %v2104_v11, %v4795_v30  ;;  %vm2106_vm1 = vcmp.eq.f32.partialorder %v2104_v11, %v4798_v15 }
 0x7d9   :  { %v2107_v19 = vsel %vm2105_vm15, 1.0, %v5398_v37  ;;  %v2108_v22 = vsel %vm2106_vm1, 1.0, %v5398_v37  ;;  %vm5409_vm15 = vcmask 654336  }
 0x7da   :  { %v5085_v60 = vld [vmem:[#allocation3] sm:$0x1] }
 0x867   :  { %v1890_v14 = vpop.f32.mrf.mxu1 }
 0x868   :  { %v1891_v50 = vadd.f32 %v1890_v14, %v4986_v57 }
 0x869   :  { %v4031_v20 = vpop.f32.mrf.mxu1 }
 0x86a   :  { %v1894_v28 = vmax.f32 %v1891_v50, 0.0 }
 0x86c   :  { %4041 = vmatmul.mubr.msk.f32.vlgmr.msra.gmra.mxu0 %vm295_vm5, %v1894_v28 }
 0x86d   :  { %4055 = vmatpush3.msk.msra.mxu0 %vm103_vm0, %v2064_v10  ;;  %4058 = vmatprep.mubr.msk.f32.mxu0 %vm208_vm3, %v2107_v19  ;;  %v5031_v10 = vld [vmem:[%s5387_s10 + $0x8] sm:$0xff] }
 0x86e   :  { %4056 = vmatprep.subr.mxu0 %v2063_v33  ;;  %4048 = vmatpush3.msra.mxu1 %v5031_v10 }
 0x86f   :  { %4057 = vmatpush3.msra.mxu0 %v2063_v33  ;;  %4049 = vmatprep.subr.mxu1 %v5398_v37 }
 0x870   :  { %4059 = vmatmul.mubr.msk.f32.vlgmr.msra.gmra.mxu0 %vm208_vm3, %v2108_v22  ;;  %4061 = vmatprep.subr.msk.mxu0 %vm5402_vm6, %v4702_v36  ;;  %v1412_v22 = vadd.f32 %v4872_v59, %v4693_v16 }
 0x871   :  { %4062 = vmatpush3.msk.msra.mxu0 %vm5402_vm6, %v4702_v36  ;;  %4050 = vmatpush3.msra.mxu1 %v5036_v39 }
 0x872   :  { %4063 = vmatprep.subr.mxu0 %v4707_v23  ;;  %4082 = vmatprep.subr.mxu1 %v5398_v37  ;;  %4323 = vtanh.f32 %v1412_v22 }
 0x873   :  { %4064 = vmatpush3.msra.mxu0 %v4707_v23 }
 0x874   :  { %4065 = vmatprep.subr.mxu0 %v4716_v24 }
 0x875   :  { %4066 = vmatpush3.msra.mxu0 %v4716_v24 }
 0x876   :  { %4067 = vmatprep.subr.mxu0 %v4723_v17 }
 0x877   :  { %4068 = vmatpush3.msra.mxu0 %v4723_v17 }
 0x878   :  { %4069 = vmatprep.subr.mxu0 %v4730_v25 }
 0x879   :  { %4070 = vmatpush3.msra.mxu0 %v4730_v25 }
 0x87a   :  { %4071 = vmatprep.subr.mxu0 %v4737_v26 }
 0x87b   :  { %4072 = vmatpush3.msra.mxu0 %v4737_v26 }
 0x87c   :  { %4073 = vmatprep.subr.mxu0 %v4744_v27 }
 0x87d   :  { %4074 = vmatpush3.msra.mxu0 %v4744_v27 }
 0x87e   :  { %4075 = vmatprep.subr.mxu0 %v4809_v34 }
 0x87f   :  { %4076 = vmatpush3.msra.mxu0 %v4809_v34 }
 0x880   :  { %4077 = vmatprep.subr.mxu0 %v4816_v29 }
 0x881   :  { %4078 = vmatpush3.msra.mxu0 %v4816_v29 }
 0x882   :  { %4105 = vmatprep.subr.mxu0 %v5398_v37 }
 0x92c   :  { %v1964_v9 = vpop.f32.mrf.mxu0 }
 0x92d   :  { %v1968_v11 = vadd.f32 %v1964_v9, %v5048_v52  ;;  %v1407_v9 = vadd.f32 %v4874_v62, %v4693_v16  ;;  %v4324_v62 = vpop.eup %4323 }
 0x92e   :  { %v4042_v13 = vpop.f32.mrf.mxu0 }
 0x92f   :  { %v1969_v14 = vmax.f32 %v1968_v11, 0.0  ;;  %4325 = vtanh.f32 %v1407_v9 }
 0x930   :  { %v4060_v50 = vpop.f32.mrf.mxu0 }
 0x931   :  { %4052 = vmatmul.mubr.msk.f32.vlgmr.msra.gmra.mxu1 %vm295_vm5, %v1969_v14 }
 0x932   :  { %v2184_v20 = vpop.f32.mrf.mxu0  ;;  %4083 = vmatpush3.msra.mxu1 %v4826_v42  ;;  %4102 = vmatprep.mubr.msk.f32.mxu1 %vm5404_vm2, %v5398_v37 }
 0x933   :  { %4079 = vmatprep.mubr.msk.f32.mxu0 %vm5405_vm4, %v2184_v20  ;;  %4084 = vmatprep.subr.mxu1 %v5398_v37 }
 0x934   :  { %4080 = vmatmul.mubr.msk.f32.vlgmr.msra.gmra.mxu0 %vm5406_vm7, %v4060_v50  ;;  %4085 = vmatpush3.msra.mxu1 %v4831_v43 }
 0x935   :  { %4086 = vmatprep.subr.mxu1 %v5398_v37  ;;  %4106 = vmatpush3.msra.mxu0 %v4917_v21 }
 0x936   :  { %4087 = vmatpush3.msra.mxu1 %v4838_v44  ;;  %4107 = vmatprep.subr.mxu0 %v5398_v37 }
 0x937   :  { %4088 = vmatprep.subr.mxu1 %v5398_v37  ;;  %4108 = vmatpush3.msra.mxu0 %v4928_v49 }
 0x938   :  { %4089 = vmatpush3.msra.mxu1 %v4845_v45  ;;  %4109 = vmatprep.subr.mxu0 %v5398_v37 }
 0x939   :  { %4090 = vmatprep.subr.mxu1 %v5398_v37  ;;  %4110 = vmatpush3.msra.mxu0 %v4934_v5 }
 0x93a   :  { %4091 = vmatpush3.msra.mxu1 %v4852_v46  ;;  %4111 = vmatprep.subr.mxu0 %v5398_v37 }
 0x93b   :  { %4092 = vmatprep.subr.mxu1 %v5398_v37  ;;  %4112 = vmatpush3.msra.mxu0 %v4941_v8 }
 0x93c   :  { %4093 = vmatpush3.msra.mxu1 %v4859_v47  ;;  %4113 = vmatprep.mubr.msk.f32.mxu0 %vm5404_vm2, %v5398_v37 }
 0x93d   :  { %4094 = vmatprep.subr.mxu1 %v5398_v37 }
 0x93e   :  { %4095 = vmatpush3.msra.mxu1 %v4866_v48 }
 0x93f   :  { %4096 = vmatprep.subr.mxu1 %v5398_v37 }
 0x940   :  { %4097 = vmatpush3.msra.mxu1 %v4888_v7 }
 0x941   :  { %4098 = vmatprep.subr.mxu1 %v5398_v37 }
 0x942   :  { %4099 = vmatpush3.msra.mxu1 %v4893_v54 }
 0x943   :  { %4100 = vmatprep.subr.mxu1 %v5398_v37 }
 0x944   :  { %4101 = vmatpush3.msra.mxu1 %v4906_v12 }
 0x945   :  { %4116 = vmatprep.subr.mxu1 %v5398_v37 }
 0x9f1   :  { %v2039_v18 = vpop.f32.mrf.mxu1 }
 0x9f2   :  { %v2040_v28 = vadd.f32 %v2039_v18, %v5085_v60 }
 0x9f3   :  { %v4053_v19 = vpop.f32.mrf.mxu1 }
 0x9f4   :  { %2044 = vst.msk [vmem:[%s5391_s12] sm:$0x1] %vm5401_vm8, %v2040_v28  ;;  %v4081_v33 = vpop.f32.mrf.mxu0 }
 0x9f5   :  { %v2271_v11 = vadd.f32 %v4081_v33, %v4883_v6  ;;  %v4326_v33 = vpop.eup %4325 }
 0x9f6   :  { %v2265_v41 = vpop.f32.mrf.mxu0 }
 0x9f7   :  { %v2266_v13 = vadd.f32 %v4883_v6, %v2265_v41  ;;  %v2275_v50 = vmax.f32 %v2271_v11, 0.0 }
 0x9f9   :  { %v2274_v14 = vmax.f32 %v2266_v13, 0.0  ;;  %v2281_v19 = vrot.slane %v2275_v50, 1 }
 0x9fb   :  { %v2277_v20 = vrot.slane %v2274_v14, 1  ;;  %v2283_v59 = vmax.f32 %v2275_v50, %v2281_v19 }
 0x9fd   :  { %v2279_v18 = vmax.f32 %v2274_v14, %v2277_v20 }
 0x9ff   :  { %v2289_v28 = vrot.slane %v2279_v18, 4  ;;  %v2285_v37 = vrot.slane %v2279_v18, 2  ;;  %v2293_v2 = vrot.slane %v2279_v18, 6 }
 0xa01   :  { %2290 = vrot.lane.b32.xlu0 %v2289_v28, %s4343_s2  ;;  %2286 = vrot.lane.b32.xlu1 %v2285_v37, %s4347_s6 }
 0xa05   :  { %2298 = vrot.lane.b32.xlu0 %v2283_v59, %s4342_s30  ;;  %2294 = vrot.lane.b32.xlu1 %v2293_v2, %s4348_s23 }
 0xa09   :  { %2554 = vperm.xlu0 %4282, %v4324_v62   ;;  %2550 = vperm.xlu1 %4281, %v4326_v33  }
 0xa0d   :  { %2541 = vrot.lane.b32.xlu0 %v4324_v62, %s4342_s30  ;;  %2533 = vrot.lane.b32.xlu1 %v4648_v53, %s4343_s2  ;;  %v5410_v53 = vmov 0.0  }
 0xa11   :  { %2539 = vrot.lane.b32.xlu0 %v4326_v33, %s4342_s30  ;;  %2531 = vrot.lane.b32.xlu1 %v4654_v56, %s4343_s2 }
 0xa73   :  { %v2291_v37 = vpop.permute.xlu0 %2290  ;;  %v2287_v22 = vpop.permute.xlu1 %2286 }
 0xa74   :  { %v2301_v41 = vsel %vm5407_vm13, %v2279_v18, %v2287_v22 }
 0xa75   :  { %v2302_v2 = vsel %vm295_vm5, %v2301_v41, %v2291_v37 }
 0xa77   :  { %v2299_v9 = vpop.permute.xlu0 %2298  ;;  %v2295_v11 = vpop.permute.xlu1 %2294 }
 0xa78   :  { %v2303_v13 = vsel %vm5408_vm14, %v2302_v2, %v2295_v11 }
 0xa79   :  { %v2304_v14 = vsel %vm1563_vm10, %v2303_v13, %v2299_v9 }
 0xa7a   :  { %4103 = vmatmul.mubr.msk.f32.vlgmr.msra.gmra.mxu1 %vm5409_vm15, %v2304_v14 }
 0xa7b   :  { %4117 = vmatpush3.msra.mxu1 %v4979_v51  ;;  %4124 = vmatprep.mubr.msk.f32.mxu1 %vm5404_vm2, %v5410_v53 }
 0xa7c   :  { %4118 = vmatprep.subr.mxu1 %v5410_v53 }
 0xa7d   :  { %4119 = vmatpush3.msra.mxu1 %v5024_v61 }
 0xa7e   :  { %4120 = vmatprep.subr.mxu1 %v5410_v53 }
 0xa7f   :  { %4121 = vmatpush3.msra.mxu1 %v5031_v10 }
 0xa80   :  { %4122 = vmatprep.subr.mxu1 %v5410_v53 }
 0xa81   :  { %4123 = vmatpush3.msra.mxu1 %v5036_v39 }
 0xa82   :  { %4134 = vmatprep.subr.msk.mxu1 %vm5402_vm6, %v4702_v36 }
 0xa84   :  { %v2555_v56 = vpop.permute.xlu0 %2554  ;;  %v2551_v50 = vpop.permute.xlu1 %2550 }
 0xa85   :  { %v2558_v20 = vmul.f32 %v2555_v56, %v4765_v40  ;;  %v2557_v18 = vmul.f32 %v2551_v50, %v4762_v38 }
 0xa87   :  { %v2560_v19 = vsel %vm1577_vm9, %v2558_v20, 0.0  ;;  %v2559_v28 = vsel %vm208_vm3, %v2557_v18, 0.0 }
 0xa88   :  { %v2561_v59 = vadd.f32 %v2560_v19, %v2559_v28  ;;  %v2542_v62 = vpop.permute.xlu0 %2541  ;;  %v2534_v33 = vpop.permute.xlu1 %2533 }
 0xa89   :  { %v2546_v37 = vsel %vm295_vm5, %v4573_v63, %v2534_v33 }
 0xa8a   :  { %v2562_v22 = vrot.slane %v2561_v59, 4  ;;  %v2548_v41 = vsel %vm1563_vm10, %v2546_v37, %v2542_v62 }
 0xa8b   :  { %4127 = vmatprep.subr.msk.mxu0 %vm103_vm0, %v2548_v41 }
 0xa8c   :  { %v2563_v9 = vadd.f32 %v2562_v22, %v2561_v59  ;;  %v2532_v22 = vpop.permute.xlu1 %2531 }
 0xa8e   :  { %v2564_v2 = vrot.slane %v2563_v9, 2 }
 0xa90   :  { %v2565_v11 = vadd.f32 %v2564_v2, %v2563_v9 }
 0xa92   :  { %v2566_v13 = vrot.slane %v2565_v11, 1 }
 0xa94   :  { %v2567_v14 = vadd.f32 %v2566_v13, %v2565_v11  ;;  %v2540_v13 = vpop.permute.xlu0 %2539 }
 0xa96   :  { %vm2568_vm1 = vcmp.gt.f32.partialorder %v2551_v50, %v2567_v14  ;;  %vm2569_vm4 = vcmp.gt.f32.partialorder %v2555_v56, %v2567_v14  ;;  %vm2570_vm7 = vcmp.eq.f32.partialorder %v2551_v50, %v2567_v14  ;;  %vm2571_vm13 = vcmp.eq.f32.partialorder %v2555_v56, %v2567_v14 }
 0xa97   :  { %vm2572_vm14 = vmand %vm2570_vm7, %vm1541_vm11  ;;  %v2545_v14 = vsel %vm295_vm5, %v4577_v0, %v2532_v22 }
 0xa98   :  { %vm2573_vm15 = vmand %vm2571_vm13, %vm1542_vm12  ;;  %vm5414_vm13 = vcmask 0  }
 0xa99   :  { %vm2574_vm8 = vmor %vm2568_vm1, %vm2572_vm14  ;;  %vm5411_vm1 = vcmask 1040384   ;;  %vm5415_vm14 = vcmask 130048  }
 0xa9a   :  { %vm2575_vm6 = vmor %vm2569_vm4, %vm2573_vm15  ;;  %v3603_v63 = vsel %vm2574_vm8, 1.0, %v5410_v53  ;;  %vm5412_vm4 = vcmask 531456   ;;  %vm5416_vm15 = vcmask 392192  }
 0xa9b   :  { %v3604_v20 = vsel %vm2575_vm6, 1.0, %v5410_v53  ;;  %v2580_v18 = vsel %vm208_vm3, %v3603_v63, 0.0  ;;  %vm5413_vm7 = vmmov %vm5412_vm4 }
 0xa9c   :  { %v2581_v19 = vsel %vm1577_vm9, %v3604_v20, 0.0 }
 0xa9d   :  { %v2582_v50 = vadd.f32 %v2581_v19, %v2580_v18  ;;  %v2547_v18 = vsel %vm1563_vm10, %v2545_v14, %v2540_v13 }
 0xa9f   :  { %v2583_v56 = vrot.slane %v2582_v50, 4 }
 0xaa1   :  { %v2584_v28 = vadd.f32 %v2583_v56, %v2582_v50 }
 0xaa3   :  { %v2585_v59 = vrot.slane %v2584_v28, 2 }
 0xaa5   :  { %v2586_v62 = vadd.f32 %v2585_v59, %v2584_v28 }
 0xaa7   :  { %v2587_v33 = vrot.slane %v2586_v62, 1 }
 0xaa9   :  { %v2588_v37 = vadd.f32 %v2587_v33, %v2586_v62 }
 0xaab   :  { %vm2589_vm8 = vcmp.eq.f32.partialorder %v2588_v37, %v4795_v30  ;;  %vm2590_vm6 = vcmp.eq.f32.partialorder %v2588_v37, %v4798_v15 }
 0xaac   :  { %v2591_v20 = vsel %vm2589_vm8, 1.0, %v5410_v53  ;;  %v2592_v19 = vsel %vm2590_vm6, 1.0, %v5410_v53  ;;  %vm5417_vm8 = vcmask 654336   ;;  %vm5418_vm6 = vmmov %vm5411_vm1 }
 0xb3a   :  { %v2374_v9 = vpop.f32.mrf.mxu1 }
 0xb3b   :  { %v2375_v2 = vadd.f32 %v2374_v9, %v4986_v57 }
 0xb3c   :  { %v4104_v11 = vpop.f32.mrf.mxu1 }
 0xb3d   :  { %v2378_v63 = vmax.f32 %v2375_v2, 0.0 }
 0xb3f   :  { %4114 = vmatmul.mubr.msk.f32.vlgmr.msra.gmra.mxu0 %vm295_vm5, %v2378_v63 }
 0xb40   :  { %4128 = vmatpush3.msk.msra.mxu0 %vm103_vm0, %v2548_v41  ;;  %4131 = vmatprep.mubr.msk.f32.mxu0 %vm208_vm3, %v2591_v20 }
 0xb41   :  { %4129 = vmatprep.subr.mxu0 %v2547_v18 }
 0xb42   :  { %4130 = vmatpush3.msra.mxu0 %v2547_v18 }
 0xb43   :  { %4132 = vmatmul.mubr.msk.f32.vlgmr.msra.gmra.mxu0 %vm208_vm3, %v2592_v19  ;;  %4155 = vmatprep.subr.mxu0 %v5410_v53 }
 0xb44   :  { %4156 = vmatpush3.msra.mxu0 %v4826_v42  ;;  %4175 = vmatprep.mubr.msk.f32.mxu0 %vm5404_vm2, %v5410_v53 }
 0xb45   :  { %4157 = vmatprep.subr.mxu0 %v5410_v53 }
 0xb46   :  { %4158 = vmatpush3.msra.mxu0 %v4831_v43 }
 0xb47   :  { %4159 = vmatprep.subr.mxu0 %v5410_v53 }
 0xb48   :  { %4160 = vmatpush3.msra.mxu0 %v4838_v44 }
 0xb49   :  { %4161 = vmatprep.subr.mxu0 %v5410_v53 }
 0xb4a   :  { %4162 = vmatpush3.msra.mxu0 %v4845_v45 }
 0xb4b   :  { %4163 = vmatprep.subr.mxu0 %v5410_v53 }
 0xb4c   :  { %4164 = vmatpush3.msra.mxu0 %v4852_v46 }
 0xb4d   :  { %4165 = vmatprep.subr.mxu0 %v5410_v53 }
 0xb4e   :  { %4166 = vmatpush3.msra.mxu0 %v4859_v47 }
 0xb4f   :  { %4167 = vmatprep.subr.mxu0 %v5410_v53 }
 0xb50   :  { %4168 = vmatpush3.msra.mxu0 %v4866_v48 }
 0xb51   :  { %4169 = vmatprep.subr.mxu0 %v5410_v53 }
 0xb52   :  { %4170 = vmatpush3.msra.mxu0 %v4888_v7 }
 0xb53   :  { %4171 = vmatprep.subr.mxu0 %v5410_v53 }
 0xb54   :  { %4172 = vmatpush3.msra.mxu0 %v4893_v54 }
 0xb55   :  { %4173 = vmatprep.subr.mxu0 %v5410_v53 }
 0xb56   :  { %4174 = vmatpush3.msra.mxu0 %v4906_v12 }
 0xb57   :  { %4189 = vmatprep.subr.mxu0 %v5410_v53 }
 0xbff   :  { %v2448_v0 = vpop.f32.mrf.mxu0 }
 0xc00   :  { %v2452_v41 = vadd.f32 %v2448_v0, %v5048_v52 }
 0xc01   :  { %v4115_v50 = vpop.f32.mrf.mxu0 }
 0xc02   :  { %v2453_v56 = vmax.f32 %v2452_v41, 0.0 }
 0xc03   :  { %v4133_v28 = vpop.f32.mrf.mxu0 }
 0xc04   :  { %4125 = vmatmul.mubr.msk.f32.vlgmr.msra.gmra.mxu1 %vm295_vm5, %v2453_v56 }
 0xc05   :  { %4135 = vmatpush3.msk.msra.mxu1 %vm5411_vm1, %v4702_v36  ;;  %v2668_v59 = vpop.f32.mrf.mxu0 }
 0xc06   :  { %4136 = vmatprep.subr.mxu1 %v4707_v23  ;;  %4152 = vmatprep.mubr.msk.f32.mxu1 %vm5412_vm4, %v2668_v59 }
 0xc07   :  { %4137 = vmatpush3.msra.mxu1 %v4707_v23 }
 0xc08   :  { %4138 = vmatprep.subr.mxu1 %v4716_v24 }
 0xc09   :  { %4139 = vmatpush3.msra.mxu1 %v4716_v24 }
 0xc0a   :  { %4140 = vmatprep.subr.mxu1 %v4723_v17 }
 0xc0b   :  { %4141 = vmatpush3.msra.mxu1 %v4723_v17 }
 0xc0c   :  { %4142 = vmatprep.subr.mxu1 %v4730_v25 }
 0xc0d   :  { %4143 = vmatpush3.msra.mxu1 %v4730_v25  ;;  %v1496_v25 = vadd.f32 %v4876_v3, %v4693_v16 }
 0xc0e   :  { %4144 = vmatprep.subr.mxu1 %v4737_v26 }
 0xc0f   :  { %4145 = vmatpush3.msra.mxu1 %v4737_v26  ;;  %4327 = vtanh.f32 %v1496_v25 }
 0xc10   :  { %4146 = vmatprep.subr.mxu1 %v4744_v27 }
 0xc11   :  { %4147 = vmatpush3.msra.mxu1 %v4744_v27  ;;  %v1491_v27 = vadd.f32 %v4878_v4, %v4693_v16 }
 0xc12   :  { %4148 = vmatprep.subr.mxu1 %v4809_v34 }
 0xc13   :  { %4149 = vmatpush3.msra.mxu1 %v4809_v34  ;;  %4329 = vtanh.f32 %v1491_v27 }
 0xc14   :  { %4150 = vmatprep.subr.mxu1 %v4816_v29 }
 0xc15   :  { %4151 = vmatpush3.msra.mxu1 %v4816_v29 }
 0xc16   :  { %4153 = vmatmul.mubr.msk.f32.vlgmr.msra.gmra.mxu1 %vm5413_vm7, %v4133_v28  ;;  %4178 = vmatprep.subr.mxu1 %v5410_v53 }
 0xc17   :  { %4179 = vmatpush3.msra.mxu1 %v4917_v21  ;;  %4186 = vmatprep.mubr.msk.f32.mxu1 %vm5404_vm2, %v5410_v53 }
 0xc18   :  { %4180 = vmatprep.subr.mxu1 %v5410_v53 }
 0xc19   :  { %4181 = vmatpush3.msra.mxu1 %v4928_v49 }
 0xc1a   :  { %4182 = vmatprep.subr.mxu1 %v5410_v53 }
 0xc1b   :  { %4183 = vmatpush3.msra.mxu1 %v4934_v5 }
 0xc1c   :  { %4184 = vmatprep.subr.mxu1 %v5410_v53  ;;  %v4328_v16 = vpop.eup %4327 }
 0xc1d   :  { %4185 = vmatpush3.msra.mxu1 %v4941_v8 }
 0xc20   :  { %v4330_v4 = vpop.eup %4329 }
 0xcc4   :  { %v2523_v36 = vpop.f32.mrf.mxu1 }
 0xcc5   :  { %v2524_v23 = vadd.f32 %v2523_v36, %v5085_v60 }
 0xcc6   :  { %v4126_v24 = vpop.f32.mrf.mxu1 }
 0xcc7   :  { %3602 = vst.msk [vmem:[%s5391_s12 + $0x1] sm:$0x1] %vm5414_vm13, %v2524_v23 }
 0xcd6   :  { %v4154_v17 = vpop.f32.mrf.mxu1 }
 0xcd7   :  { %v2755_v34 = vadd.f32 %v4154_v17, %v4883_v6 }
 0xcd8   :  { %v2749_v26 = vpop.f32.mrf.mxu1 }
 0xcd9   :  { %v2750_v29 = vadd.f32 %v4883_v6, %v2749_v26  ;;  %v2759_v33 = vmax.f32 %v2755_v34, 0.0 }
 0xcdb   :  { %v2758_v62 = vmax.f32 %v2750_v29, 0.0  ;;  %v2765_v9 = vrot.slane %v2759_v33, 1 }
 0xcdd   :  { %v2761_v37 = vrot.slane %v2758_v62, 1  ;;  %v2767_v3 = vmax.f32 %v2759_v33, %v2765_v9 }
 0xcdf   :  { %v2763_v22 = vmax.f32 %v2758_v62, %v2761_v37 }
 0xce1   :  { %v2773_v2 = vrot.slane %v2763_v22, 4  ;;  %v2769_v11 = vrot.slane %v2763_v22, 2  ;;  %v2777_v13 = vrot.slane %v2763_v22, 6 }
 0xce3   :  { %2774 = vrot.lane.b32.xlu0 %v2773_v2, %s4343_s2  ;;  %2770 = vrot.lane.b32.xlu1 %v2769_v11, %s4347_s6 }
 0xce7   :  { %2782 = vrot.lane.b32.xlu0 %v2767_v3, %s4342_s30  ;;  %2778 = vrot.lane.b32.xlu1 %v2777_v13, %s4348_s23 }
 0xceb   :  { %3038 = vperm.xlu0 %4282, %v4328_v16   ;;  %3034 = vperm.xlu1 %4281, %v4330_v4  }
 0xcef   :  { %3025 = vrot.lane.b32.xlu0 %v4328_v16, %s4342_s30  ;;  %3017 = vrot.lane.b32.xlu1 %v4650_v55, %s4343_s2  ;;  %v5247_v55 = vld [vmem:[%s5383_s4 + $0x40] sm:$0x1] }
 0xcf3   :  { %3023 = vrot.lane.b32.xlu0 %v4330_v4, %s4342_s30  ;;  %3015 = vrot.lane.b32.xlu1 %v4658_v58, %s4343_s2 }
 0xd55   :  { %v2775_v6 = vpop.permute.xlu0 %2774  ;;  %v2771_v14 = vpop.permute.xlu1 %2770 }
 0xd56   :  { %v2785_v63 = vsel %vm5415_vm14, %v2763_v22, %v2771_v14 }
 0xd57   :  { %v2786_v18 = vsel %vm295_vm5, %v2785_v63, %v2775_v6  ;;  %v5419_v63 = vld [vmem:[#allocation4_spill] sm:$0xff] }
 0xd59   :  { %v2783_v20 = vpop.permute.xlu0 %2782  ;;  %v2779_v19 = vpop.permute.xlu1 %2778 }
 0xd5a   :  { %v2787_v0 = vsel %vm5416_vm15, %v2786_v18, %v2779_v19 }
 0xd5b   :  { %v2788_v41 = vsel %vm1563_vm10, %v2787_v0, %v2783_v20 }
 0xd5c   :  { %4176 = vmatmul.mubr.msk.f32.vlgmr.msra.gmra.mxu0 %vm5417_vm8, %v2788_v41  ;;  %v4337_v41 = vld [vmem:[%s5383_s4 + $0x10] sm:$0xff] }
 0xd5d   :  { %4190 = vmatpush3.msra.mxu0 %v4979_v51  ;;  %4197 = vmatprep.mubr.msk.f32.mxu0 %vm5404_vm2, %v5410_v53 }
 0xd5e   :  { %4191 = vmatprep.subr.mxu0 %v5410_v53 }
 0xd5f   :  { %4192 = vmatpush3.msra.mxu0 %v5024_v61 }
 0xd60   :  { %4193 = vmatprep.subr.mxu0 %v5410_v53 }
 0xd61   :  { %4194 = vmatpush3.msra.mxu0 %v5031_v10 }
 0xd62   :  { %4195 = vmatprep.subr.mxu0 %v5410_v53 }
 0xd63   :  { %4196 = vmatpush3.msra.mxu0 %v5036_v39 }
 0xd64   :  { %4207 = vmatprep.subr.msk.mxu0 %vm5418_vm6, %v5247_v55 }
 0xd66   :  { %v3039_v58 = vpop.permute.xlu0 %3038  ;;  %v3035_v50 = vpop.permute.xlu1 %3034 }
 0xd67   :  { %v3042_v56 = vmul.f32 %v3039_v58, %v4765_v40  ;;  %v3041_v28 = vmul.f32 %v3035_v50, %v4762_v38 }
 0xd69   :  { %v3044_v59 = vsel %vm1577_vm9, %v3042_v56, 0.0  ;;  %v3043_v36 = vsel %vm208_vm3, %v3041_v28, 0.0 }
 0xd6a   :  { %v3045_v23 = vadd.f32 %v3044_v59, %v3043_v36  ;;  %v3026_v24 = vpop.permute.xlu0 %3025  ;;  %v3018_v17 = vpop.permute.xlu1 %3017 }
 0xd6b   :  { %v3030_v25 = vsel %vm295_vm5, %v4581_v1, %v3018_v17 }
 0xd6c   :  { %v3046_v26 = vrot.slane %v3045_v23, 4  ;;  %v3032_v27 = vsel %vm1563_vm10, %v3030_v25, %v3026_v24 }
 0xd6d   :  { %4200 = vmatprep.subr.msk.mxu1 %vm103_vm0, %v3032_v27 }
 0xd6e   :  { %v3047_v34 = vadd.f32 %v3046_v26, %v3045_v23  ;;  %v3016_v4 = vpop.permute.xlu1 %3015  ;;  %v3024_v14 = vpop.permute.xlu0 %3023 }
 0xd6f   :  { %v3029_v20 = vsel %vm295_vm5, %v5419_v63, %v3016_v4 }
 0xd70   :  { %v3048_v29 = vrot.slane %v3047_v34, 2  ;;  %v3031_v0 = vsel %vm1563_vm10, %v3029_v20, %v3024_v14 }
 0xd72   :  { %v3049_v40 = vadd.f32 %v3048_v29, %v3047_v34 }
 0xd74   :  { %v3050_v62 = vrot.slane %v3049_v40, 1 }
 0xd76   :  { %v3051_v38 = vadd.f32 %v3050_v62, %v3049_v40 }
 0xd78   :  { %vm3052_vm1 = vcmp.gt.f32.partialorder %v3035_v50, %v3051_v38  ;;  %vm3053_vm4 = vcmp.gt.f32.partialorder %v3039_v58, %v3051_v38  ;;  %vm3054_vm7 = vcmp.eq.f32.partialorder %v3035_v50, %v3051_v38  ;;  %vm3055_vm13 = vcmp.eq.f32.partialorder %v3039_v58, %v3051_v38  ;;  %v4339_v58 = vld [vmem:[%s5383_s4] sm:$0xff] }
 0xd79   :  { %vm3056_vm14 = vmand %vm3054_vm7, %vm1541_vm11  ;;  %vm5425_vm7 = vcmask 392192  }
 0xd7a   :  { %vm3057_vm15 = vmand %vm3055_vm13, %vm1542_vm12  ;;  %vm5426_vm13 = vcmask 654336  }
 0xd7b   :  { %vm3058_vm8 = vmor %vm3052_vm1, %vm3056_vm14  ;;  %vm5423_vm1 = vcmask 0  }
 0xd7c   :  { %vm3059_vm6 = vmor %vm3053_vm4, %vm3057_vm15  ;;  %v3615_v1 = vsel %vm3058_vm8, 1.0, %v5410_v53  ;;  %vm5424_vm4 = vcmask 130048  }
 0xd7d   :  { %v3616_v33 = vsel %vm3059_vm6, 1.0, %v5410_v53  ;;  %v3064_v37 = vsel %vm208_vm3, %v3615_v1, 0.0 }
 0xd7e   :  { %v3065_v22 = vsel %vm1577_vm9, %v3616_v33, 0.0 }
 0xd7f   :  { %v3066_v9 = vadd.f32 %v3065_v22, %v3064_v37 }
 0xd81   :  { %v3067_v2 = vrot.slane %v3066_v9, 4 }
 0xd83   :  { %v3068_v11 = vadd.f32 %v3067_v2, %v3066_v9 }
 0xd85   :  { %v3069_v3 = vrot.slane %v3068_v11, 2 }
 0xd87   :  { %v3070_v31 = vadd.f32 %v3069_v3, %v3068_v11 }
 0xd89   :  { %v3071_v13 = vrot.slane %v3070_v31, 1 }
 0xd8b   :  { %v3072_v16 = vadd.f32 %v3071_v13, %v3070_v31 }
 0xd8d   :  { %vm3073_vm11 = vcmp.eq.f32.partialorder %v3072_v16, %v4795_v30  ;;  %vm3074_vm9 = vcmp.eq.f32.partialorder %v3072_v16, %v4798_v15 }
 0xd8e   :  { %v3075_v19 = vsel %vm3073_vm11, 1.0, %v5410_v53  ;;  %v3076_v30 = vsel %vm3074_vm9, 1.0, %v5410_v53 }
 0xe1c   :  { %v2858_v32 = vpop.f32.mrf.mxu0 }
 0xe1d   :  { %v2859_v35 = vadd.f32 %v2858_v32, %v4986_v57 }
 0xe1e   :  { %v4177_v6 = vpop.f32.mrf.mxu0 }
 0xe1f   :  { %v2862_v18 = vmax.f32 %v2859_v35, 0.0 }
 0xe21   :  { %4187 = vmatmul.mubr.msk.f32.vlgmr.msra.gmra.mxu1 %vm295_vm5, %v2862_v18 }
 0xe22   :  { %4201 = vmatpush3.msk.msra.mxu1 %vm103_vm0, %v3032_v27  ;;  %4204 = vmatprep.mubr.msk.f32.mxu1 %vm208_vm3, %v3075_v19  ;;  %vm5420_vm0 = vcmask 1040384  }
 0xe23   :  { %4202 = vmatprep.subr.mxu1 %v3031_v0 }
 0xe24   :  { %4203 = vmatpush3.msra.mxu1 %v3031_v0 }
 0xe25   :  { %4205 = vmatmul.mubr.msk.f32.vlgmr.msra.gmra.mxu1 %vm208_vm3, %v3076_v30  ;;  %4228 = vmatprep.subr.mxu1 %v5410_v53  ;;  %vm5421_vm3 = vcmask 531456  }
 0xe26   :  { %4229 = vmatpush3.msra.mxu1 %v4826_v42  ;;  %4248 = vmatprep.mubr.msk.f32.mxu1 %vm5404_vm2, %v5410_v53  ;;  %vm5422_vm12 = vmmov %vm5421_vm3 }
 0xe27   :  { %4230 = vmatprep.subr.mxu1 %v5410_v53 }
 0xe28   :  { %4231 = vmatpush3.msra.mxu1 %v4831_v43 }
 0xe29   :  { %4232 = vmatprep.subr.mxu1 %v5410_v53 }
 0xe2a   :  { %4233 = vmatpush3.msra.mxu1 %v4838_v44 }
 0xe2b   :  { %4234 = vmatprep.subr.mxu1 %v5410_v53 }
 0xe2c   :  { %4235 = vmatpush3.msra.mxu1 %v4845_v45 }
 0xe2d   :  { %4236 = vmatprep.subr.mxu1 %v5410_v53 }
 0xe2e   :  { %4237 = vmatpush3.msra.mxu1 %v4852_v46 }
 0xe2f   :  { %4238 = vmatprep.subr.mxu1 %v5410_v53 }
 0xe30   :  { %4239 = vmatpush3.msra.mxu1 %v4859_v47  ;;  %v4332_v47 = vld [vmem:[%s5383_s4 + $0x38] sm:$0xff] }
 0xe31   :  { %4240 = vmatprep.subr.mxu1 %v5410_v53 }
 0xe32   :  { %4241 = vmatpush3.msra.mxu1 %v4866_v48  ;;  %v4333_v48 = vld [vmem:[%s5383_s4 + $0x30] sm:$0xff] }
 0xe33   :  { %4242 = vmatprep.subr.mxu1 %v5410_v53 }
 0xe34   :  { %4243 = vmatpush3.msra.mxu1 %v4888_v7  ;;  %v4334_v7 = vld [vmem:[%s5383_s4 + $0x28] sm:$0xff] }
 0xe35   :  { %4244 = vmatprep.subr.mxu1 %v5410_v53 }
 0xe36   :  { %4245 = vmatpush3.msra.mxu1 %v4893_v54  ;;  %v4335_v54 = vld [vmem:[%s5383_s4 + $0x20] sm:$0xff] }
 0xe37   :  { %4246 = vmatprep.subr.mxu1 %v5410_v53 }
 0xe38   :  { %4247 = vmatpush3.msra.mxu1 %v4906_v12  ;;  %v4336_v12 = vld [vmem:[%s5383_s4 + $0x18] sm:$0xff] }
 0xe39   :  { %4262 = vmatprep.subr.mxu1 %v5410_v53 }
 0xee1   :  { %v2932_v15 = vpop.f32.mrf.mxu1 }
 0xee2   :  { %v2936_v42 = vadd.f32 %v2932_v15, %v5048_v52 }
 0xee3   :  { %v4188_v43 = vpop.f32.mrf.mxu1 }
 0xee4   :  { %v2937_v44 = vmax.f32 %v2936_v42, 0.0 }
 0xee5   :  { %v4206_v45 = vpop.f32.mrf.mxu1 }
 0xee6   :  { %4198 = vmatmul.mubr.msk.f32.vlgmr.msra.gmra.mxu0 %vm295_vm5, %v2937_v44 }
 0xee7   :  { %4208 = vmatpush3.msk.msra.mxu0 %vm5420_vm0, %v5247_v55  ;;  %v3152_v46 = vpop.f32.mrf.mxu1  ;;  %v4338_v55 = vld [vmem:[%s5383_s4 + $0x8] sm:$0xff] }
 0xee8   :  { %4209 = vmatprep.subr.mxu0 %v4332_v47  ;;  %4225 = vmatprep.mubr.msk.f32.mxu0 %vm5421_vm3, %v3152_v46 }
 0xee9   :  { %4210 = vmatpush3.msra.mxu0 %v4332_v47 }
 0xeea   :  { %4211 = vmatprep.subr.mxu0 %v4333_v48 }
 0xeeb   :  { %4212 = vmatpush3.msra.mxu0 %v4333_v48 }
 0xeec   :  { %4213 = vmatprep.subr.mxu0 %v4334_v7 }
 0xeed   :  { %4214 = vmatpush3.msra.mxu0 %v4334_v7 }
 0xeee   :  { %4215 = vmatprep.subr.mxu0 %v4335_v54 }
 0xeef   :  { %4216 = vmatpush3.msra.mxu0 %v4335_v54 }
 0xef0   :  { %4217 = vmatprep.subr.mxu0 %v4336_v12 }
 0xef1   :  { %4218 = vmatpush3.msra.mxu0 %v4336_v12 }
 0xef2   :  { %4219 = vmatprep.subr.mxu0 %v4337_v41 }
 0xef3   :  { %4220 = vmatpush3.msra.mxu0 %v4337_v41 }
 0xef4   :  { %4221 = vmatprep.subr.mxu0 %v4338_v55 }
 0xef5   :  { %4222 = vmatpush3.msra.mxu0 %v4338_v55 }
 0xef6   :  { %4223 = vmatprep.subr.mxu0 %v4339_v58 }
 0xef7   :  { %4224 = vmatpush3.msra.mxu0 %v4339_v58 }
 0xef8   :  { %4226 = vmatmul.mubr.msk.f32.vlgmr.msra.gmra.mxu0 %vm5422_vm12, %v4206_v45  ;;  %4251 = vmatprep.subr.mxu0 %v5410_v53 }
 0xef9   :  { %4252 = vmatpush3.msra.mxu0 %v4917_v21  ;;  %4259 = vmatprep.mubr.msk.f32.mxu0 %vm5404_vm2, %v5410_v53 }
 0xefa   :  { %4253 = vmatprep.subr.mxu0 %v5410_v53 }
 0xefb   :  { %4254 = vmatpush3.msra.mxu0 %v4928_v49  ;;  %v4340_v49 = vld [vmem:[%s5385_s5] ss:$0 sm:$0xff] }
 0xefc   :  { %4255 = vmatprep.subr.mxu0 %v5410_v53 }
 0xefd   :  { %4256 = vmatpush3.msra.mxu0 %v4934_v5 }
 0xefe   :  { %4257 = vmatprep.subr.mxu0 %v5410_v53 }
 0xeff   :  { %4258 = vmatpush3.msra.mxu0 %v4941_v8 }
 0xfa6   :  { %v3007_v50 = vpop.f32.mrf.mxu0 }
 0xfa7   :  { %v3008_v56 = vadd.f32 %v3007_v50, %v5085_v60 }
 0xfa8   :  { %v4199_v28 = vpop.f32.mrf.mxu0 }
 0xfa9   :  { %3614 = vst.msk [vmem:[%s5391_s12 + $0x2] sm:$0x1] %vm5423_vm1, %v3008_v56 }
 0xfb8   :  { %v4227_v21 = vpop.f32.mrf.mxu0 }
 0xfb9   :  { %v3239_v5 = vadd.f32 %v4340_v49, %v4227_v21 }
 0xfba   :  { %v3233_v59 = vpop.f32.mrf.mxu0 }
 0xfbb   :  { %v3234_v36 = vadd.f32 %v4340_v49, %v3233_v59  ;;  %v3243_v24 = vmax.f32 %v3239_v5, 0.0 }
 0xfbd   :  { %v3242_v23 = vmax.f32 %v3234_v36, 0.0  ;;  %v3249_v25 = vrot.slane %v3243_v24, 1 }
 0xfbf   :  { %v3245_v8 = vrot.slane %v3242_v23, 1  ;;  %v3251_v34 = vmax.f32 %v3243_v24, %v3249_v25 }
 0xfc1   :  { %v3247_v17 = vmax.f32 %v3242_v23, %v3245_v8 }
 0xfc3   :  { %v3257_v26 = vrot.slane %v3247_v17, 4  ;;  %v3253_v27 = vrot.slane %v3247_v17, 2  ;;  %v3261_v29 = vrot.slane %v3247_v17, 6 }
 0xfc5   :  { %3258 = vrot.lane.b32.xlu0 %v3257_v26, %s4343_s2  ;;  %3254 = vrot.lane.b32.xlu1 %v3253_v27, %s4347_s6 }
 0xfc9   :  { %3266 = vrot.lane.b32.xlu0 %v3251_v34, %s4342_s30  ;;  %3262 = vrot.lane.b32.xlu1 %v3261_v29, %s4348_s23 }
0x1037   :  { %v3259_v40 = vpop.permute.xlu0 %3258  ;;  %v3255_v62 = vpop.permute.xlu1 %3254 }
0x1038   :  { %v3269_v38 = vsel %vm5424_vm4, %v3247_v17, %v3255_v62 }
0x1039   :  { %v3270_v33 = vsel %vm295_vm5, %v3269_v38, %v3259_v40 }
0x103b   :  { %v3267_v1 = vpop.permute.xlu0 %3266  ;;  %v3263_v37 = vpop.permute.xlu1 %3262 }
0x103c   :  { %v3271_v22 = vsel %vm5425_vm7, %v3270_v33, %v3263_v37 }
0x103d   :  { %v3272_v9 = vsel %vm1563_vm10, %v3271_v22, %v3267_v1  ;;  %vm5427_vm10 = vmmov %vm5423_vm1 }
0x103e   :  { %4249 = vmatmul.mubr.msk.f32.vlgmr.msra.gmra.mxu1 %vm5426_vm13, %v3272_v9 }
0x103f   :  { %4263 = vmatpush3.msra.mxu1 %v4979_v51  ;;  %4270 = vmatprep.mubr.msk.f32.mxu1 %vm5404_vm2, %v5410_v53 }
0x1040   :  { %4264 = vmatprep.subr.mxu1 %v5410_v53 }
0x1041   :  { %4265 = vmatpush3.msra.mxu1 %v5024_v61 }
0x1042   :  { %4266 = vmatprep.subr.mxu1 %v5410_v53 }
0x1043   :  { %4267 = vmatpush3.msra.mxu1 %v5031_v10 }
0x1044   :  { %4268 = vmatprep.subr.mxu1 %v5410_v53 }
0x1045   :  { %4269 = vmatpush3.msra.mxu1 %v5036_v39 }
0x10fe   :  { %v3342_v2 = vpop.f32.mrf.mxu1 }
0x10ff   :  { %v3343_v11 = vadd.f32 %v3342_v2, %v4986_v57 }
0x1100   :  { %v4250_v3 = vpop.f32.mrf.mxu1 }
0x1101   :  { %v3346_v51 = vmax.f32 %v3343_v11, 0.0 }
0x1103   :  { %4260 = vmatmul.mubr.msk.f32.vlgmr.msra.gmra.mxu0 %vm295_vm5, %v3346_v51 }
0x11c3   :  { %v3416_v31 = vpop.f32.mrf.mxu0 }
0x11c4   :  { %v3420_v13 = vadd.f32 %v3416_v31, %v5048_v52 }
0x11c5   :  { %v4261_v16 = vpop.f32.mrf.mxu0 }
0x11c6   :  { %v3421_v61 = vmax.f32 %v3420_v13, 0.0 }
0x11c8   :  { %4271 = vmatmul.mubr.msk.f32.vlgmr.msra.gmra.mxu1 %vm295_vm5, %v3421_v61 }
0x1288   :  { %v3491_v4 = vpop.f32.mrf.mxu1 }
0x1289   :  { %v3492_v10 = vadd.f32 %v3491_v4, %v5085_v60 }
0x128a   :  { %v4272_v53 = vpop.f32.mrf.mxu1 }
0x128b   :  { %3626 = vst.msk [vmem:[%s5391_s12 + $0x3] sm:$0x1] %vm5427_vm10, %v3492_v10 }

</bundles_post_ra>
